<compile_context>
chip_gen: v7x
topology: tpu7x:2x2x1
jax: 0.10.0
libtpu: 0.0.40
codegen_flags: <defaults>
</compile_context>

<pallas_src>
import jax
import jax.numpy as jnp
from jax.experimental import pallas as pl
from jax.experimental.pallas import tpu as pltpu


# ---------------------------------------------------------------------------
# Helpers
# ---------------------------------------------------------------------------

def _round_up(x, m):
    return (x + m - 1) // m * m


# ---------------------------------------------------------------------------
# Fused kernel: encoders + MLP classifier + per-row BCE term -> one output slab
# ---------------------------------------------------------------------------

def _fakenet_fused_kernel(vid_ref, aud_ref, y_ref,
                          wv_ref, wa_ref, be_ref,
                          w1_ref, b1_ref, w2_ref, b2_ref, w3_ref, b3_ref,
                          feat_ref):
    f32 = jnp.float32
    bf16 = jnp.bfloat16

    bm = feat_ref.shape[0]        # rows in this batch block
    enc_w = wv_ref.shape[1]       # 128-lane-dense packed encoder width (>= 2*last_dim)
    d = w1_ref.shape[1]           # classifier hidden dim (= 2 * last_dim)
    c = w3_ref.shape[1]           # num_classes
    w_out = feat_ref.shape[1]

    # ---- stand-in encoders: lane-dense packed linear projections -------------------
    # wv lanes [0:L] = video proj, wa lanes [L:2L] = audio proj, everything else zero,
    # so the MXU result is already the lane-contiguous [v | a | 0] block (no lane
    # concat, no w1 row split, no 4x lane-padded weight DMA). bf16 cast of the f32
    # activations happens here, hidden under the input DMA.
    # TODO(synk): real C3dResnet18 / VGG encoder bodies (classes not in provided source).
    enc = (jnp.dot(vid_ref[...].astype(bf16), wv_ref[...], preferred_element_type=f32)
           + jnp.dot(aud_ref[...].astype(bf16), wa_ref[...], preferred_element_type=f32)
           + be_ref[...])

    # ---- temporal classifier: Flatten -> Linear -> Dropout -> ReLU -> Linear ->
    #      Dropout -> ReLU -> Linear   (Dropout = inference no-op).
    # w1 rows [d:enc_w] are zero, so enc @ w1p == cat(v, a) @ w1.
    # bf16 into the MXU, f32 accumulate + f32 elementwise (v5e-safe).
    h1 = jnp.maximum(
        jnp.dot(enc.astype(bf16), w1_ref[...], preferred_element_type=f32) + b1_ref[...],
        0.0)
    h2 = jnp.maximum(
        jnp.dot(h1.astype(bf16), w2_ref[...], preferred_element_type=f32) + b2_ref[...],
        0.0)
    logits = jnp.dot(h2.astype(bf16), w3_ref[...], preferred_element_type=f32) + b3_ref[...]

    # ---- per-row BCEWithLogits term (mean over valid rows is done in the wrapper) ---
    y = y_ref[...]
    e = jnp.exp(-jnp.abs(logits))
    # log1p(e) with a small-argument series branch: same precision as log1p using only
    # ops with guaranteed Mosaic lowerings.
    log1p_e = jnp.where(e > 0.01,
                        jnp.log(1.0 + e),
                        e * (1.0 + e * (-0.5 + e * (1.0 / 3.0))))
    per = jnp.maximum(logits, 0.0) - logits * y + log1p_e

    # ---- ONE lane-dense full-width store. Slab lane layout:
    #   [0:L] vid | [L:2L] aud | [2L:enc_w] 0 | [enc_w:enc_w+d] cls
    #   | [enc_w+d : +c] logits | [+c : +2c] per-row BCE | rest 0
    tail_w = w_out - enc_w - d
    if c == 1:
        lane = jax.lax.broadcasted_iota(jnp.int32, (bm, tail_w), 1)
        tail = jnp.where(lane == 0, logits, jnp.where(lane == 1, per, 0.0))
    else:
        parts = [logits, per]
        if tail_w > 2 * c:
            parts.append(jnp.zeros((bm, tail_w - 2 * c), f32))
        tail = jnp.concatenate(parts, axis=-1)
    feat_ref[...] = jnp.concatenate([enc, h2, tail], axis=-1)


# ---------------------------------------------------------------------------
# Parameters (lane-dense packed, bf16 weights / f32 biases)
# ---------------------------------------------------------------------------

def init_fakenet_params(key, vid_feat_dim, aud_feat_dim, last_dim, num_classes=1):
    L = last_dim
    D = 2 * L
    enc_w = _round_up(D, 128)
    f32 = jnp.float32
    ks = jax.random.split(key, 5)
    scale = 0.02

    def rnd(k, shape):
        return scale * jax.random.normal(k, shape, f32)

    # Packed encoder projections: video in lanes [0:L], audio in lanes [L:2L].
    w_v = jnp.zeros((vid_feat_dim, enc_w), f32).at[:, 0:L].set(rnd(ks[0], (vid_feat_dim, L)))
    w_a = jnp.zeros((aud_feat_dim, enc_w), f32).at[:, L:D].set(rnd(ks[1], (aud_feat_dim, L)))
    b_enc = jnp.zeros((1, enc_w), f32)        # [v_b | a_b | 0], zeros here

    # MLP classifier; w1 rows padded to enc_w so cat(v,a) @ w1 == enc @ w1p.
    w1 = jnp.zeros((enc_w, D), f32).at[0:D, :].set(rnd(ks[2], (D, D)))
    w2 = rnd(ks[3], (D, D))
    w3 = rnd(ks[4], (D, num_classes))

    return {
        "w_v": w_v.astype(jnp.bfloat16),
        "w_a": w_a.astype(jnp.bfloat16),
        "b_enc": b_enc,
        "w1": w1.astype(jnp.bfloat16),
        "b1": jnp.zeros((1, D), f32),
        "w2": w2.astype(jnp.bfloat16),
        "b2": jnp.zeros((1, D), f32),
        "w3": w3.astype(jnp.bfloat16),
        "b3": jnp.zeros((1, num_classes), f32),
    }


# ---------------------------------------------------------------------------
# FakeNet forward (mode='VA', predict_label=True)
# ---------------------------------------------------------------------------

def fakenet_forward(params, vid, aud, y=None, out_feat=False):
    Kv, enc_w = params["w_v"].shape
    Ka = params["w_a"].shape[0]
    D = params["w1"].shape[1]
    L = D // 2
    C = params["w3"].shape[1]

    B = vid.shape[0]
    # Free contiguous reshapes only -- no wrapper-side cast or extra passes over the
    # activations; the bf16 cast happens in-kernel.
    vid_flat = vid.reshape(B, -1)
    aud_flat = aud.reshape(B, -1)
    assert vid_flat.shape[1] == Kv and aud_flat.shape[1] == Ka

    if y is not None:
        y_f = jnp.asarray(y, jnp.float32).reshape(B, -1)
        if y_f.shape[-1] != C:
            # Guard against the (B,) vs (B,C) mismatch that would otherwise broadcast
            # into a (B,B) loss. TODO(synk): CrossEntropyLoss path for num_classes > 1.
            y_f = jnp.broadcast_to(y_f[:, :1], (B, C))
    else:
        y_f = jnp.zeros((B, C), jnp.float32)

    # Batch blocking: one resident block for small B (no pad, no extra wrapper pass);
    # 256-row blocks for large B so the MXU M dim is full, per-call overhead is
    # amortized, and v7x can shard blocks across its two TensorCores.
    BM = 256
    if B > BM:
        bm = BM
        B_pad = _round_up(B, bm)
    else:
        bm = B
        B_pad = B
    nb = B_pad // bm
    if B_pad != B:
        pad = ((0, B_pad - B), (0, 0))
        vid_flat = jnp.pad(vid_flat, pad)
        aud_flat = jnp.pad(aud_flat, pad)
        y_f = jnp.pad(y_f, pad)
        # NOTE: padded rows carry bias-derived values in the slab; they are sliced off
        # below and excluded from the BCE mean.

    w_out = _round_up(enc_w + D + 2 * C, 128)

    weight_bytes = int(((Kv + Ka) * enc_w + enc_w * D + D * D + D * C) * 2
                       + (enc_w + 2 * D + C) * 4)
    block_bytes = int(bm * (Kv + Ka + C + w_out) * 4)
    vmem_limit = int(min(max(4 * (block_bytes + weight_bytes), 32 * 1024 * 1024),
                         64 * 1024 * 1024))

    cost = pl.CostEstimate(
        flops=int(2 * B_pad * ((Kv + Ka) * enc_w + enc_w * D + D * D + D * C)),
        transcendentals=int(2 * B_pad * C),
        bytes_accessed=int(B_pad * (Kv + Ka + C + w_out) * 4 + weight_bytes),
    )

    feat_slab = pl.pallas_call(
        _fakenet_fused_kernel,
        out_shape=jax.ShapeDtypeStruct((B_pad, w_out), jnp.float32),
        grid=(nb,),
        in_specs=[
            # batch-blocked activations / labels
            pl.BlockSpec((bm, Kv), lambda i: (i, 0)),
            pl.BlockSpec((bm, Ka), lambda i: (i, 0)),
            pl.BlockSpec((bm, C), lambda i: (i, 0)),
            # VMEM-resident packed weights (constant block index -> fetched once)
            pl.BlockSpec((Kv, enc_w), lambda i: (0, 0)),
            pl.BlockSpec((Ka, enc_w), lambda i: (0, 0)),
            pl.BlockSpec((1, enc_w), lambda i: (0, 0)),
            pl.BlockSpec((enc_w, D), lambda i: (0, 0)),
            pl.BlockSpec((1, D), lambda i: (0, 0)),
            pl.BlockSpec((D, D), lambda i: (0, 0)),
            pl.BlockSpec((1, D), lambda i: (0, 0)),
            pl.BlockSpec((D, C), lambda i: (0, 0)),
            pl.BlockSpec((1, C), lambda i: (0, 0)),
        ],
        out_specs=pl.BlockSpec((bm, w_out), lambda i: (i, 0)),
        compiler_params=pltpu.CompilerParams(
            dimension_semantics=("parallel",),
            vmem_limit_bytes=vmem_limit,
        ),
        cost_estimate=cost,
    )(vid_flat, aud_flat, y_f,
      params["w_v"], params["w_a"], params["b_enc"],
      params["w1"], params["b1"], params["w2"], params["b2"],
      params["w3"], params["b3"])

    output = {}
    if out_feat:
        output["vid"] = feat_slab[:B, None, 0:L]                 # (B, t=1, last_dim)
        output["aud"] = feat_slab[:B, None, L:2 * L]             # (B, t=1, last_dim)
    output["logits"] = feat_slab[:B, enc_w + D:enc_w + D + C]    # (B, num_classes)
    if out_feat:
        output["cls"] = feat_slab[:B, enc_w:enc_w + D]           # (B, 2*last_dim)
    if y is not None:
        per = feat_slab[:B, enc_w + D + C:enc_w + D + 2 * C]     # per-row BCE terms
        output["BCE"] = (jnp.sum(per) / (B * C)).reshape(1)      # (1,)
    return output


# ---------------------------------------------------------------------------
# Driver
# ---------------------------------------------------------------------------

if __name__ == "__main__":
    # small, module-consistent shapes
    B = 2
    img_in_dim = 3        # video channels
    frames_per_clip = 8
    H = W = 16
    mfcc_bins = 13
    last_dim = 32
    num_classes = 1

    key = jax.random.PRNGKey(0)
    k_vid, k_aud, k_y, k_params = jax.random.split(key, 4)

    vid = jax.random.normal(k_vid, (B, img_in_dim, frames_per_clip, H, W), jnp.float32)
    aud = jax.random.normal(k_aud, (B, 1, frames_per_clip, mfcc_bins), jnp.float32)
    y = (jax.random.uniform(k_y, (B, 1)) > 0.5).astype(jnp.float32)

    vid_feat_dim = img_in_dim * frames_per_clip * H * W   # 6144
    aud_feat_dim = 1 * frames_per_clip * mfcc_bins        # 104

    params = init_fakenet_params(k_params, vid_feat_dim, aud_feat_dim,
                                 last_dim, num_classes)

    out = fakenet_forward(params, vid, aud, y=y, out_feat=True)
    jax.block_until_ready(out["logits"])
    jax.block_until_ready(out["BCE"])

    assert out["logits"].shape == (B, num_classes)
    assert out["cls"].shape == (B, last_dim * 2)
    assert out["vid"].shape == (B, 1, last_dim)
    assert out["aud"].shape == (B, 1, last_dim)
    assert out["BCE"].shape == (1,)
    assert bool(jnp.isfinite(out["BCE"][0]))

    print("KERNEL_OK")
</pallas_src>

<mosaic_0001>
module attributes {stable_mosaic.version = 11 : i64} {
  func.func @_fakenet_fused_kernel(%arg0: i32, %arg1: memref<2x6144xf32, #tpu.memory_space<vmem>>, %arg2: memref<2x104xf32, #tpu.memory_space<vmem>>, %arg3: memref<2x1xf32, #tpu.memory_space<vmem>>, %arg4: memref<6144x128xbf16, #tpu.memory_space<vmem>>, %arg5: memref<104x128xbf16, #tpu.memory_space<vmem>>, %arg6: memref<1x128xf32, #tpu.memory_space<vmem>>, %arg7: memref<128x64xbf16, #tpu.memory_space<vmem>>, %arg8: memref<1x64xf32, #tpu.memory_space<vmem>>, %arg9: memref<64x64xbf16, #tpu.memory_space<vmem>>, %arg10: memref<1x64xf32, #tpu.memory_space<vmem>>, %arg11: memref<64x1xbf16, #tpu.memory_space<vmem>>, %arg12: memref<1x1xf32, #tpu.memory_space<vmem>>, %arg13: memref<2x256xf32, #tpu.memory_space<vmem>>) attributes {dimension_semantics = [#tpu.dimension_semantics<parallel>], iteration_bounds = array<i64: 1>, scalar_prefetch = 0 : i64, scratch_operands = 0 : i64, tpu.core_type = #tpu.core_type<tc>, window_params = [{transform_indices = @transform_0, window_bounds = array<i64: 2, 6144>}, {transform_indices = @transform_1, window_bounds = array<i64: 2, 104>}, {transform_indices = @transform_2, window_bounds = array<i64: 2, 1>}, {pipeline_mode = #tpu.pipeline_mode<synchronous>, transform_indices = @transform_3, window_bounds = array<i64: 6144, 128>}, {pipeline_mode = #tpu.pipeline_mode<synchronous>, transform_indices = @transform_4, window_bounds = array<i64: 104, 128>}, {pipeline_mode = #tpu.pipeline_mode<synchronous>, transform_indices = @transform_5, window_bounds = array<i64: 1, 128>}, {pipeline_mode = #tpu.pipeline_mode<synchronous>, transform_indices = @transform_6, window_bounds = array<i64: 128, 64>}, {pipeline_mode = #tpu.pipeline_mode<synchronous>, transform_indices = @transform_7, window_bounds = array<i64: 1, 64>}, {pipeline_mode = #tpu.pipeline_mode<synchronous>, transform_indices = @transform_8, window_bounds = array<i64: 64, 64>}, {pipeline_mode = #tpu.pipeline_mode<synchronous>, transform_indices = @transform_9, window_bounds = array<i64: 1, 64>}, {pipeline_mode = #tpu.pipeline_mode<synchronous>, transform_indices = @transform_10, window_bounds = array<i64: 64, 1>}, {pipeline_mode = #tpu.pipeline_mode<synchronous>, transform_indices = @transform_11, window_bounds = array<i64: 1, 1>}, {transform_indices = @transform_12, window_bounds = array<i64: 2, 256>}]} {
    %c0 = arith.constant 0 : index
    %c0_0 = arith.constant 0 : index
    %0 = vector.load %arg1[%c0, %c0_0] : memref<2x6144xf32, #tpu.memory_space<vmem>>, vector<2x6144xf32>
    %1 = arith.truncf %0 : vector<2x6144xf32> to vector<2x6144xbf16>
    %c0_1 = arith.constant 0 : index
    %c0_2 = arith.constant 0 : index
    %2 = vector.load %arg4[%c0_1, %c0_2] : memref<6144x128xbf16, #tpu.memory_space<vmem>>, vector<6144x128xbf16>
    %cst = arith.constant dense<0.000000e+00> : vector<2x128xf32>
    %3 = tpu.matmul %1, %2, %cst {dimension_numbers = #tpu.dot_dimension_numbers<[1], [0], [0], [1], [0, 0, 1, 1], [], []>} : vector<2x6144xbf16>, vector<6144x128xbf16>, vector<2x128xf32> -> vector<2x128xf32>
    %c0_3 = arith.constant 0 : index
    %c0_4 = arith.constant 0 : index
    %4 = vector.load %arg2[%c0_3, %c0_4] : memref<2x104xf32, #tpu.memory_space<vmem>>, vector<2x104xf32>
    %5 = arith.truncf %4 : vector<2x104xf32> to vector<2x104xbf16>
    %c0_5 = arith.constant 0 : index
    %c0_6 = arith.constant 0 : index
    %6 = vector.load %arg5[%c0_5, %c0_6] : memref<104x128xbf16, #tpu.memory_space<vmem>>, vector<104x128xbf16>
    %cst_7 = arith.constant dense<0.000000e+00> : vector<2x128xf32>
    %7 = tpu.matmul %5, %6, %cst_7 {dimension_numbers = #tpu.dot_dimension_numbers<[1], [0], [0], [1], [0, 0, 1, 1], [], []>} : vector<2x104xbf16>, vector<104x128xbf16>, vector<2x128xf32> -> vector<2x128xf32>
    %8 = arith.addf %3, %7 : vector<2x128xf32>
    %c0_8 = arith.constant 0 : index
    %c0_9 = arith.constant 0 : index
    %9 = vector.load %arg6[%c0_8, %c0_9] : memref<1x128xf32, #tpu.memory_space<vmem>>, vector<1x128xf32>
    %10 = vector.broadcast %9 : vector<1x128xf32> to vector<2x128xf32>
    %11 = arith.addf %8, %10 : vector<2x128xf32>
    %12 = arith.truncf %11 : vector<2x128xf32> to vector<2x128xbf16>
    %c0_10 = arith.constant 0 : index
    %c0_11 = arith.constant 0 : index
    %13 = vector.load %arg7[%c0_10, %c0_11] : memref<128x64xbf16, #tpu.memory_space<vmem>>, vector<128x64xbf16>
    %cst_12 = arith.constant dense<0.000000e+00> : vector<2x64xf32>
    %14 = tpu.matmul %12, %13, %cst_12 {dimension_numbers = #tpu.dot_dimension_numbers<[1], [0], [0], [1], [0, 0, 1, 1], [], []>} : vector<2x128xbf16>, vector<128x64xbf16>, vector<2x64xf32> -> vector<2x64xf32>
    %c0_13 = arith.constant 0 : index
    %c0_14 = arith.constant 0 : index
    %15 = vector.load %arg8[%c0_13, %c0_14] : memref<1x64xf32, #tpu.memory_space<vmem>>, vector<1x64xf32>
    %16 = vector.broadcast %15 : vector<1x64xf32> to vector<2x64xf32>
    %17 = arith.addf %14, %16 : vector<2x64xf32>
    %cst_15 = arith.constant 0.000000e+00 : f32
    %18 = vector.broadcast %cst_15 : f32 to vector<2x64xf32>
    %19 = arith.maximumf %17, %18 : vector<2x64xf32>
    %20 = arith.truncf %19 : vector<2x64xf32> to vector<2x64xbf16>
    %c0_16 = arith.constant 0 : index
    %c0_17 = arith.constant 0 : index
    %21 = vector.load %arg9[%c0_16, %c0_17] : memref<64x64xbf16, #tpu.memory_space<vmem>>, vector<64x64xbf16>
    %cst_18 = arith.constant dense<0.000000e+00> : vector<2x64xf32>
    %22 = tpu.matmul %20, %21, %cst_18 {dimension_numbers = #tpu.dot_dimension_numbers<[1], [0], [0], [1], [0, 0, 1, 1], [], []>} : vector<2x64xbf16>, vector<64x64xbf16>, vector<2x64xf32> -> vector<2x64xf32>
    %c0_19 = arith.constant 0 : index
    %c0_20 = arith.constant 0 : index
    %23 = vector.load %arg10[%c0_19, %c0_20] : memref<1x64xf32, #tpu.memory_space<vmem>>, vector<1x64xf32>
    %24 = vector.broadcast %23 : vector<1x64xf32> to vector<2x64xf32>
    %25 = arith.addf %22, %24 : vector<2x64xf32>
    %cst_21 = arith.constant 0.000000e+00 : f32
    %26 = vector.broadcast %cst_21 : f32 to vector<2x64xf32>
    %27 = arith.maximumf %25, %26 : vector<2x64xf32>
    %28 = arith.truncf %27 : vector<2x64xf32> to vector<2x64xbf16>
    %c0_22 = arith.constant 0 : index
    %c0_23 = arith.constant 0 : index
    %29 = vector.load %arg11[%c0_22, %c0_23] : memref<64x1xbf16, #tpu.memory_space<vmem>>, vector<64x1xbf16>
    %cst_24 = arith.constant dense<0.000000e+00> : vector<2x1xf32>
    %30 = tpu.matmul %28, %29, %cst_24 {dimension_numbers = #tpu.dot_dimension_numbers<[1], [0], [0], [1], [0, 0, 1, 1], [], []>} : vector<2x64xbf16>, vector<64x1xbf16>, vector<2x1xf32> -> vector<2x1xf32>
    %c0_25 = arith.constant 0 : index
    %c0_26 = arith.constant 0 : index
    %31 = vector.load %arg12[%c0_25, %c0_26] : memref<1x1xf32, #tpu.memory_space<vmem>>, vector<1x1xf32>
    %32 = vector.broadcast %31 : vector<1x1xf32> to vector<2x1xf32>
    %33 = arith.addf %30, %32 : vector<2x1xf32>
    %c0_27 = arith.constant 0 : index
    %c0_28 = arith.constant 0 : index
    %34 = vector.load %arg3[%c0_27, %c0_28] : memref<2x1xf32, #tpu.memory_space<vmem>>, vector<2x1xf32>
    %35 = math.absf %33 : vector<2x1xf32>
    %cst_29 = arith.constant 0.000000e+00 : f32
    %36 = vector.broadcast %cst_29 : f32 to vector<2x1xf32>
    %37 = arith.subf %36, %35 : vector<2x1xf32>
    %38 = math.exp %37 : vector<2x1xf32>
    %cst_30 = arith.constant 0.00999999977 : f32
    %39 = vector.broadcast %cst_30 : f32 to vector<2x1xf32>
    %40 = arith.cmpf ogt, %38, %39 : vector<2x1xf32>
    %cst_31 = arith.constant 1.000000e+00 : f32
    %41 = vector.broadcast %cst_31 : f32 to vector<2x1xf32>
    %42 = arith.addf %41, %38 : vector<2x1xf32>
    %43 = math.log %42 : vector<2x1xf32>
    %cst_32 = arith.constant 0.333333343 : f32
    %44 = vector.broadcast %cst_32 : f32 to vector<2x1xf32>
    %45 = arith.mulf %38, %44 : vector<2x1xf32>
    %cst_33 = arith.constant -5.000000e-01 : f32
    %46 = vector.broadcast %cst_33 : f32 to vector<2x1xf32>
    %47 = arith.addf %46, %45 : vector<2x1xf32>
    %48 = arith.mulf %38, %47 : vector<2x1xf32>
    %cst_34 = arith.constant 1.000000e+00 : f32
    %49 = vector.broadcast %cst_34 : f32 to vector<2x1xf32>
    %50 = arith.addf %49, %48 : vector<2x1xf32>
    %51 = arith.mulf %38, %50 : vector<2x1xf32>
    %52 = arith.select %40, %43, %51 : vector<2x1xi1>, vector<2x1xf32>
    %cst_35 = arith.constant 0.000000e+00 : f32
    %53 = vector.broadcast %cst_35 : f32 to vector<2x1xf32>
    %54 = arith.maximumf %33, %53 : vector<2x1xf32>
    %55 = arith.mulf %33, %34 : vector<2x1xf32>
    %56 = arith.subf %54, %55 : vector<2x1xf32>
    %57 = arith.addf %56, %52 : vector<2x1xf32>
    %58 = tpu.iota {dimensions = array<i32: 1>} : vector<2x64xi32>
    %c0_i32 = arith.constant 0 : i32
    %59 = vector.broadcast %c0_i32 : i32 to vector<2x64xi32>
    %60 = arith.cmpi eq, %58, %59 : vector<2x64xi32>
    %c1_i32 = arith.constant 1 : i32
    %61 = vector.broadcast %c1_i32 : i32 to vector<2x64xi32>
    %62 = arith.cmpi eq, %58, %61 : vector<2x64xi32>
    %cst_36 = arith.constant 0.000000e+00 : f32
    %63 = vector.shape_cast %57 : vector<2x1xf32> to vector<2x1xf32>
    %64 = vector.broadcast %63 : vector<2x1xf32> to vector<2x64xf32>
    %65 = vector.broadcast %cst_36 : f32 to vector<2x64xf32>
    %66 = arith.select %62, %64, %65 : vector<2x64xi1>, vector<2x64xf32>
    %67 = vector.shape_cast %33 : vector<2x1xf32> to vector<2x1xf32>
    %68 = vector.broadcast %67 : vector<2x1xf32> to vector<2x64xf32>
    %69 = arith.select %60, %68, %66 : vector<2x64xi1>, vector<2x64xf32>
    %70 = tpu.concatenate %11, %27, %69 in 1 : vector<2x128xf32>, vector<2x64xf32>, vector<2x64xf32> -> vector<2x256xf32>
    %c0_37 = arith.constant 0 : index
    %c0_38 = arith.constant 0 : index
    %71 = vector.load %arg13[%c0_37, %c0_38] : memref<2x256xf32, #tpu.memory_space<vmem>>, vector<2x256xf32>
    tpu.vector_store %arg13[%c0_37, %c0_38], %70 {strides = array<i32>} : memref<2x256xf32, #tpu.memory_space<vmem>>, vector<2x256xf32>,
    return
  }
  func.func @transform_0(%arg0: i32) -> (i32, i32) {
    %c0_i32 = arith.constant 0 : i32
    %c0_i32_0 = arith.constant 0 : i32
    return %arg0, %c0_i32 : i32, i32
  }
  func.func @transform_1(%arg0: i32) -> (i32, i32) {
    %c0_i32 = arith.constant 0 : i32
    %c0_i32_0 = arith.constant 0 : i32
    return %arg0, %c0_i32 : i32, i32
  }
  func.func @transform_2(%arg0: i32) -> (i32, i32) {
    %c0_i32 = arith.constant 0 : i32
    %c0_i32_0 = arith.constant 0 : i32
    return %arg0, %c0_i32 : i32, i32
  }
  func.func @transform_3(%arg0: i32) -> (i32, i32) {
    %c0_i32 = arith.constant 0 : i32
    %c0_i32_0 = arith.constant 0 : i32
    %c0_i32_1 = arith.constant 0 : i32
    return %c0_i32, %c0_i32_0 : i32, i32
  }
  func.func @transform_4(%arg0: i32) -> (i32, i32) {
    %c0_i32 = arith.constant 0 : i32
    %c0_i32_0 = arith.constant 0 : i32
    %c0_i32_1 = arith.constant 0 : i32
    return %c0_i32, %c0_i32_0 : i32, i32
  }
  func.func @transform_5(%arg0: i32) -> (i32, i32) {
    %c0_i32 = arith.constant 0 : i32
    %c0_i32_0 = arith.constant 0 : i32
    %c0_i32_1 = arith.constant 0 : i32
    return %c0_i32, %c0_i32_0 : i32, i32
  }
  func.func @transform_6(%arg0: i32) -> (i32, i32) {
    %c0_i32 = arith.constant 0 : i32
    %c0_i32_0 = arith.constant 0 : i32
    %c0_i32_1 = arith.constant 0 : i32
    return %c0_i32, %c0_i32_0 : i32, i32
  }
  func.func @transform_7(%arg0: i32) -> (i32, i32) {
    %c0_i32 = arith.constant 0 : i32
    %c0_i32_0 = arith.constant 0 : i32
    %c0_i32_1 = arith.constant 0 : i32
    return %c0_i32, %c0_i32_0 : i32, i32
  }
  func.func @transform_8(%arg0: i32) -> (i32, i32) {
    %c0_i32 = arith.constant 0 : i32
    %c0_i32_0 = arith.constant 0 : i32
    %c0_i32_1 = arith.constant 0 : i32
    return %c0_i32, %c0_i32_0 : i32, i32
  }
  func.func @transform_9(%arg0: i32) -> (i32, i32) {
    %c0_i32 = arith.constant 0 : i32
    %c0_i32_0 = arith.constant 0 : i32
    %c0_i32_1 = arith.constant 0 : i32
    return %c0_i32, %c0_i32_0 : i32, i32
  }
  func.func @transform_10(%arg0: i32) -> (i32, i32) {
    %c0_i32 = arith.constant 0 : i32
    %c0_i32_0 = arith.constant 0 : i32
    %c0_i32_1 = arith.constant 0 : i32
    return %c0_i32, %c0_i32_0 : i32, i32
  }
  func.func @transform_11(%arg0: i32) -> (i32, i32) {
    %c0_i32 = arith.constant 0 : i32
    %c0_i32_0 = arith.constant 0 : i32
    %c0_i32_1 = arith.constant 0 : i32
    return %c0_i32, %c0_i32_0 : i32, i32
  }
  func.func @transform_12(%arg0: i32) -> (i32, i32) {
    %c0_i32 = arith.constant 0 : i32
    %c0_i32_0 = arith.constant 0 : i32
    return %arg0, %c0_i32 : i32, i32
  }
}

</mosaic_0001>

<bundles_post_ra>
// kernel: tpu_custom_call.1
= control target key start
LH: loop header
LB: loop body
LE: loop exit
PB: predicated region body
PF: predicated region fallthrough
CT: control target
= control target key end

     0   :  { %s7028_s0 = inlined_call_operand.hbm [shape: f32[2,6144], index: 0, kind: input, shape index: {}]   ;;  %s7029_s1 = inlined_call_operand.hbm [shape: f32[2,104], index: 1, kind: input, shape index: {}]   ;;  %s7030_s2 = inlined_call_operand.vmem [shape: f32[2,1], index: 2, kind: input, shape index: {}]   ;;  %s7031_s3 = inlined_call_operand.hbm [shape: bf16[6144,128], index: 3, kind: input, shape index: {}]   ;;  %s7032_s4 = inlined_call_operand.hbm [shape: bf16[104,128], index: 4, kind: input, shape index: {}]   ;;  %s7033_s5 = inlined_call_operand.hbm [shape: f32[1,128], index: 5, kind: input, shape index: {}]   ;;  %s7034_s6 = inlined_call_operand.vmem [shape: bf16[128,64], index: 6, kind: input, shape index: {}]   ;;  %s7035_s7 = inlined_call_operand.hbm [shape: f32[1,64], index: 7, kind: input, shape index: {}]   ;;  %s7036_s8 = inlined_call_operand.hbm [shape: bf16[64,64], index: 8, kind: input, shape index: {}]   ;;  %s7037_s9 = inlined_call_operand.hbm [shape: f32[1,64], index: 9, kind: input, shape index: {}]   ;;  %s7038_s10 = inlined_call_operand.vmem [shape: bf16[64,1], index: 10, kind: input, shape index: {}]   ;;  %s7039_s11 = inlined_call_operand.<no memory space> [shape: f32[1,1], index: 11, kind: input, shape index: {}]   ;;  %s7040_s12 = inlined_call_operand.hbm [shape: f32[2,256], index: 12, kind: output, shape index: {}]  }
   0x1   :  { %v17_v0 = vstv %s7039_s11 }
   0x2   :  { %18 = vst [vmem:[#allocation2] sm:$0x1] %v17_v0 }
   0x3   :  { %19 = vsyncpa [#allocation4], 0 }
   0x4   :  { %20 = vsyncpa [#allocation7], 0 }
   0x5   :  { %21 = vsyncpa [#allocation10], 0 }
   0x6   :  { %22 = vsyncpa [#allocation13], 0 }
   0x7   :  { %23 = vsyncpa [#allocation16], 0 }
   0x8   :  { %24 = vsyncpa [#allocation5], 0  ;;  %s6643_s23 = smov [#allocation6]   ;;  %s6433_s27 = scalar_lea.hbm %s7029_s1, 32 }
   0x9   :  { %s41_s24 = sshll.u32 %s6643_s23, 4  ;;  %p6434_p0 = scmp.ne.s32.totalorder %s7029_s1, %s6433_s27  ;;  %s42_s24 = int_to_ptr.vmem [resolvable:$true] %s41_s24 }
   0xa   :  { %p6437_p1 = scmp.lt.u32.totalorder %s6433_s27, %s7029_s1 }
   0xc   :  { %p6439_p2 = pnand %p6437_p1, %p6434_p0 }
   0xe   :  { %6442 = shalt.err (!%p6439_p2)
}
   0xf   :  { %s6443_s13 = scalar_lea.vmem %s42_s24, 32  ;;  %p6448_p4 = scmp.lt.s32.totalorder %s42_s24, %s42_s24 }
  0x10   :  { %p6444_p3 = scmp.ne.s32.totalorder %s42_s24, %s6443_s13  ;;  %p6449_p5 = scmp.lt.s32.totalorder %s6443_s13, %s6443_s13 }
  0x12   :  { %p6450_p6 = por %p6449_p5, %p6448_p4 }
  0x14   :  { %p6451_p7 = pnand %p6450_p6, %p6444_p3 }
  0x16   :  { %6454 = shalt.err (!%p6451_p7)
}
  0x17   :  { %44 = dma.hbm_to_vmem [thread:$0]  %s7029_s1, 32, %s42_s24, [#allocation7]  }
  0x18   :  { %s6644_s16 = smov [#allocation9]   ;;  %s6645_s18 = smov [#allocation12]  }
  0x19   :  { %s64_s17 = sshll.u32 %s6644_s16, 4  ;;  %s89_s19 = sshll.u32 %s6645_s18, 4  ;;  %s65_s17 = int_to_ptr.vmem [resolvable:$true] %s64_s17  ;;  %s90_s19 = int_to_ptr.vmem [resolvable:$true] %s89_s19 }
  0x1a   :  { %s6455_s22 = scalar_lea.hbm %s7032_s4, 832 }
  0x1b   :  { %p6456_p8 = scmp.ne.s32.totalorder %s7032_s4, %s6455_s22  ;;  %p6459_p9 = scmp.lt.u32.totalorder %s6455_s22, %s7032_s4 }
  0x1d   :  { %p6461_p10 = pnand %p6459_p9, %p6456_p8 }
  0x1f   :  { %6464 = shalt.err (!%p6461_p10)
}
  0x20   :  { %s6465_s1 = scalar_lea.vmem %s65_s17, 832  ;;  %p6470_p12 = scmp.lt.s32.totalorder %s65_s17, %s65_s17 }
  0x21   :  { %p6466_p11 = scmp.ne.s32.totalorder %s65_s17, %s6465_s1  ;;  %p6471_p13 = scmp.lt.s32.totalorder %s6465_s1, %s6465_s1 }
  0x23   :  { %p6472_p0 = por %p6471_p13, %p6470_p12 }
  0x25   :  { %p6473_p1 = pnand %p6472_p0, %p6466_p11 }
  0x27   :  { %6476 = shalt.err (!%p6473_p1)
}
  0x28   :  { %s6646_s24 = smov 64   ;;  %s6647_s28 = smov 4  }
  0x29   :  { %70 = dma.hbm_to_vmem [thread:$0]  %s7032_s4, 832, %s65_s17, [#allocation10], %s6646_s24, %s6646_s24, %s6647_s28  }
  0x2a   :  { %s6477_s14 = scalar_lea.hbm %s7035_s7, 16 }
  0x2b   :  { %p6478_p2 = scmp.ne.s32.totalorder %s7035_s7, %s6477_s14  ;;  %p6481_p3 = scmp.lt.u32.totalorder %s6477_s14, %s7035_s7 }
  0x2d   :  { %p6483_p4 = pnand %p6481_p3, %p6478_p2 }
  0x2f   :  { %6486 = shalt.err (!%p6483_p4)
}
  0x30   :  { %s6487_s21 = scalar_lea.vmem %s90_s19, 16  ;;  %s6491_s22 = scalar_lea.vmem %s90_s19, 32 }
  0x31   :  { %p6488_p5 = scmp.ne.s32.totalorder %s90_s19, %s6487_s21  ;;  %p6492_p6 = scmp.lt.s32.totalorder %s90_s19, %s90_s19 }
  0x32   :  { %p6493_p7 = scmp.lt.s32.totalorder %s6491_s22, %s6487_s21 }
  0x34   :  { %p6494_p8 = por %p6493_p7, %p6492_p6 }
  0x36   :  { %p6495_p9 = pnand %p6494_p8, %p6488_p5 }
  0x38   :  { %6498 = shalt.err (!%p6495_p9)
}
  0x39   :  { %92 = dma.hbm_to_vmem [thread:$0]  %s7035_s7, 16, %s90_s19, [#allocation13]  }
  0x3a   :  { %s6648_s23 = smov [#allocation3]   ;;  %s6649_s26 = smov [#allocation8]  }
  0x3b   :  { %s31_s25 = sshll.u32 %s6648_s23, 4  ;;  %s52_s27 = sshll.u32 %s6649_s26, 4  ;;  %s32_s25 = int_to_ptr.vmem [resolvable:$true] %s31_s25  ;;  %s53_s27 = int_to_ptr.vmem [resolvable:$true] %s52_s27 }
  0x3c   :  { %s6499_s30 = scalar_lea.hbm %s7028_s0, 1536 }
  0x3d   :  { %p6500_p10 = scmp.ne.s32.totalorder %s7028_s0, %s6499_s30  ;;  %p6503_p11 = scmp.lt.u32.totalorder %s6499_s30, %s7028_s0 }
  0x3f   :  { %p6505_p12 = pnand %p6503_p11, %p6500_p10 }
  0x41   :  { %6508 = shalt.err (!%p6505_p12)
}
  0x42   :  { %s6509_s7 = scalar_lea.vmem %s32_s25, 1536  ;;  %p6514_p0 = scmp.lt.s32.totalorder %s32_s25, %s32_s25 }
  0x43   :  { %p6510_p13 = scmp.ne.s32.totalorder %s32_s25, %s6509_s7  ;;  %p6515_p1 = scmp.lt.s32.totalorder %s6509_s7, %s6509_s7 }
  0x45   :  { %p6516_p2 = por %p6515_p1, %p6514_p0 }
  0x47   :  { %p6517_p3 = pnand %p6516_p2, %p6510_p13 }
  0x49   :  { %6520 = shalt.err (!%p6517_p3)
}
  0x4a   :  { %34 = dma.hbm_to_vmem [thread:$0]  %s7028_s0, 1536, %s32_s25, [#allocation4]  }
  0x4b   :  { %s6521_s21 = scalar_lea.hbm %s7031_s3, 49152 }
  0x4c   :  { %p6522_p4 = scmp.ne.s32.totalorder %s7031_s3, %s6521_s21  ;;  %p6525_p5 = scmp.lt.u32.totalorder %s6521_s21, %s7031_s3 }
  0x4e   :  { %p6527_p6 = pnand %p6525_p5, %p6522_p4 }
  0x50   :  { %6530 = shalt.err (!%p6527_p6)
}
  0x51   :  { %s6531_s26 = scalar_lea.vmem %s53_s27, 49152  ;;  %p6536_p8 = scmp.lt.s32.totalorder %s53_s27, %s53_s27 }
  0x52   :  { %p6532_p7 = scmp.ne.s32.totalorder %s53_s27, %s6531_s26  ;;  %p6537_p9 = scmp.lt.s32.totalorder %s6531_s26, %s6531_s26 }
  0x54   :  { %p6538_p10 = por %p6537_p9, %p6536_p8 }
  0x56   :  { %p6539_p11 = pnand %p6538_p10, %p6532_p7 }
  0x58   :  { %6542 = shalt.err (!%p6539_p11)
}
  0x59   :  { %58 = dma.hbm_to_vmem [thread:$0]  %s7031_s3, 49152, %s53_s27, [#allocation7], %s6646_s24, %s6646_s24, %s6647_s28  }
  0x5a   :  { %s6650_s1 = smov [#allocation11]   ;;  %s6651_s30 = smov [#allocation14]  }
  0x5b   :  { %s77_s29 = sshll.u32 %s6650_s1, 4  ;;  %s98_s11 = sshll.u32 %s6651_s30, 4  ;;  %s78_s29 = int_to_ptr.vmem [resolvable:$true] %s77_s29  ;;  %s99_s11 = int_to_ptr.vmem [resolvable:$true] %s98_s11 }
  0x5c   :  { %s6543_s15 = scalar_lea.hbm %s7033_s5, 16 }
  0x5d   :  { %p6544_p12 = scmp.ne.s32.totalorder %s7033_s5, %s6543_s15  ;;  %p6547_p13 = scmp.lt.u32.totalorder %s6543_s15, %s7033_s5 }
  0x5f   :  { %p6549_p0 = pnand %p6547_p13, %p6544_p12 }
  0x61   :  { %6552 = shalt.err (!%p6549_p0)
}
  0x62   :  { %s6553_s3 = scalar_lea.vmem %s78_s29, 16  ;;  %s6557_s27 = scalar_lea.vmem %s78_s29, 32 }
  0x63   :  { %p6554_p1 = scmp.ne.s32.totalorder %s78_s29, %s6553_s3  ;;  %p6558_p2 = scmp.lt.s32.totalorder %s78_s29, %s78_s29 }
  0x64   :  { %p6559_p3 = scmp.lt.s32.totalorder %s6557_s27, %s6553_s3 }
  0x66   :  { %p6560_p4 = por %p6559_p3, %p6558_p2 }
  0x68   :  { %p6561_p5 = pnand %p6560_p4, %p6554_p1 }
  0x6a   :  { %6564 = shalt.err (!%p6561_p5)
}
  0x6b   :  { %80 = dma.hbm_to_vmem [thread:$0]  %s7033_s5, 16, %s78_s29, [#allocation10]  }
  0x6c   :  { %s6565_s17 = scalar_lea.hbm %s7036_s8, 512 }
  0x6d   :  { %p6566_p6 = scmp.ne.s32.totalorder %s7036_s8, %s6565_s17  ;;  %p6569_p7 = scmp.lt.u32.totalorder %s6565_s17, %s7036_s8 }
  0x6f   :  { %p6571_p8 = pnand %p6569_p7, %p6566_p6 }
  0x71   :  { %6574 = shalt.err (!%p6571_p8)
}
  0x72   :  { %s6575_s1 = scalar_lea.vmem %s99_s11, 512  ;;  %p6580_p10 = scmp.lt.s32.totalorder %s99_s11, %s99_s11 }
  0x73   :  { %p6576_p9 = scmp.ne.s32.totalorder %s99_s11, %s6575_s1  ;;  %p6581_p11 = scmp.lt.s32.totalorder %s6575_s1, %s6575_s1 }
  0x75   :  { %p6582_p12 = por %p6581_p11, %p6580_p10 }
  0x77   :  { %p6583_p13 = pnand %p6582_p12, %p6576_p9 }
  0x79   :  { %6586 = shalt.err (!%p6583_p13)
}
  0x7a   :  { %104 = dma.hbm_to_vmem [thread:$0]  %s7036_s8, 512, %s99_s11, [#allocation13], %s6646_s24, %s6646_s24, %s6647_s28  }
  0x7b   :  { %s6652_s30 = smov [#allocation15]   ;;  %s6587_s7 = scalar_lea.hbm %s7037_s9, 16 }
  0x7c   :  { %s111_s13 = sshll.u32 %s6652_s30, 4  ;;  %p6588_p0 = scmp.ne.s32.totalorder %s7037_s9, %s6587_s7  ;;  %s112_s13 = int_to_ptr.vmem [resolvable:$true] %s111_s13 }
  0x7d   :  { %p6591_p1 = scmp.lt.u32.totalorder %s6587_s7, %s7037_s9 }
  0x7f   :  { %p6593_p2 = pnand %p6591_p1, %p6588_p0 }
  0x81   :  { %6596 = shalt.err (!%p6593_p2)
}
  0x82   :  { %s6597_s27 = scalar_lea.vmem %s112_s13, 16  ;;  %s6601_s8 = scalar_lea.vmem %s112_s13, 32 }
  0x83   :  { %p6598_p3 = scmp.ne.s32.totalorder %s112_s13, %s6597_s27  ;;  %p6602_p4 = scmp.lt.s32.totalorder %s112_s13, %s112_s13 }
  0x84   :  { %p6603_p5 = scmp.lt.s32.totalorder %s6601_s8, %s6597_s27 }
  0x86   :  { %p6604_p6 = por %p6603_p5, %p6602_p4 }
  0x88   :  { %p6605_p7 = pnand %p6604_p6, %p6598_p3 }
  0x8a   :  { %6608 = shalt.err (!%p6605_p7)
}
  0x8b   :  { %114 = dma.hbm_to_vmem [thread:$0]  %s7037_s9, 16, %s112_s13, [#allocation16]  }
  0x8c   :  { %6631 = dma.done.wait [#allocation4], 1536  }
  0x8d   :  { %6632 = vsyncadd [#allocation4], 4294965760 }
  0x8e   :  { %6633 = dma.done.wait [#allocation7], 49184  }
  0x8f   :  { %6634 = vsyncadd [#allocation7], 4294918112 }
  0x90   :  { %6635 = dma.done.wait [#allocation10], 848  }
  0x91   :  { %6636 = vsyncadd [#allocation10], 4294966448 }
  0x92   :  { %6637 = dma.done.wait [#allocation13], 528  }
  0x93   :  { %6638 = vsyncadd [#allocation13], 4294966768 }
  0x94   :  { %6639 = dma.done.wait [#allocation16], 16  }
  0x95   :  { %6640 = vsyncadd [#allocation16], 4294967280  ;;  %v6653_v1 = vmov 0.0   ;;  %vm6654_vm0 = vmmov 0   ;;  %v6010_v2 = vld [vmem:[#allocation9] sm:$0xff]   ;;  %v6013_v5 = vld [vmem:[#allocation9 + $0x8] sm:$0xff]   ;;  %v172_v18 = vlaneseq }
  0x96   :  { %5932 = vmatprep.subr.bf16.mxu0 %v6653_v1  ;;  %5946 = vmatprep.mubr.msk.bf16.mxu0 %vm6654_vm0, %v6653_v1  ;;  %v6011_v3 = vld [vmem:[#allocation8 + $0x40] sm:$0xff]   ;;  %v6014_v6 = vld [vmem:[#allocation8 + $0x48] sm:$0xff]   ;;  %v6016_v8 = vld [vmem:[#allocation9 + $0x10] sm:$0xff]   ;;  %v6655_v16 = vmov 1983009808   ;;  %vm1294_vm1 = vcmask 1043456  }
  0x97   :  { %5933 = vmatpush3.bf16.msra.mxu0 %v6010_v2  ;;  %v6012_v4 = vld [vmem:[#allocation8] sm:$0xff]   ;;  %5385 = vmatprep.subr.bf16.mxu1 %v6011_v3  ;;  %v6015_v7 = vld [vmem:[#allocation8 + $0x8] sm:$0xff]   ;;  %v6017_v9 = vld [vmem:[#allocation8 + $0x50] sm:$0xff]   ;;  %v170_v17 = vunpack.c.l.s4 %v6655_v16  ;;  %v173_v23 = vshrl.u32 %v172_v18, 7  ;;  %vm1290_vm2 = vcmask 850944   ;;  %vm4763_vm3 = vcmask 523264  }
  0x98   :  { %5934 = vmatprep.subr.bf16.mxu0 %v6653_v1  ;;  %5386 = vmatpush3.bf16.msra.mxu1 %v6012_v4  ;;  %v6018_v10 = vld [vmem:[#allocation8 + $0x10] sm:$0xff]   ;;  %v6019_v11 = vld [vmem:[#allocation9 + $0x18] sm:$0xff]   ;;  %v6023_v14 = vld [vmem:[#allocation8 + $0x60] sm:$0xff]  }
  0x99   :  { %5387 = vmatprep.subr.bf16.mxu1 %v6014_v6  ;;  %v6020_v12 = vld [vmem:[#allocation8 + $0x58] sm:$0xff]   ;;  %v6022_v15 = vld [vmem:[#allocation9 + $0x20] sm:$0xff]   ;;  %v6026_v20 = vld [vmem:[#allocation8 + $0x68] sm:$0xff]   ;;  %v171_v22 = vunpack.c.0.s8 %v170_v17 }
  0x9a   :  { %v6021_v13 = vld [vmem:[#allocation8 + $0x18] sm:$0xff]   ;;  %v6024_v19 = vld [vmem:[#allocation8 + $0x20] sm:$0xff]   ;;  %v6025_v21 = vld [vmem:[#allocation9 + $0x28] sm:$0xff]  }
  0x9b   :  { %5935 = vmatpush3.bf16.msra.mxu0 %v6013_v5  ;;  %v6028_v24 = vld [vmem:[#allocation9 + $0x30] ss:$0 sps:$4 sm:$0xff]   ;;  %v6027_v25 = vld [vmem:[#allocation8 + $0x28] sm:$0xff]   ;;  %v1236_v27 = vld [vmem:[#allocation6] sm:$0x3]  ;;  %v6840_v30 = vsub.s32 %v171_v22, %v173_v23 }
  0x9c   :  { %5936 = vmatprep.subr.bf16.mxu0 %v6653_v1  ;;  %5388 = vmatpush3.bf16.msra.mxu1 %v6015_v7  ;;  %v6029_v26 = vld [vmem:[#allocation8 + $0x70] sm:$0xff]   ;;  %v6031_v29 = vld [vmem:[#allocation8 + $0xc0] sm:$0xff]   ;;  %v1296_v31 = vsel %vm1294_vm1, %v6028_v24, 0  ;;  %v6032_v32 = vld [vmem:[#allocation8 + $0x78] sm:$0xff]   ;;  %v1237_v34 = vpack.c.bf16 %v1236_v27, %v1236_v27 }
  0x9d   :  { %5389 = vmatprep.subr.bf16.mxu1 %v6017_v9  ;;  %v6030_v28 = vld [vmem:[#allocation8 + $0x30] sm:$0xff]   ;;  %v6033_v33 = vld [vmem:[#allocation8 + $0x80] sm:$0xff]   ;;  %v6034_v36 = vld [vmem:[#allocation8 + $0x38] sm:$0xff]  }
  0x9e   :  { %v144_v35 = vld [vmem:[#allocation3] sm:$0xff]  ;;  %v6036_v39 = vld [vmem:[#allocation8 + $0xc8] sm:$0xff]   ;;  %v6040_v48 = vld [vmem:[#allocation8 + $0xd0] sm:$0xff]  }
  0x9f   :  { %5937 = vmatpush3.bf16.msra.mxu0 %v6016_v8  ;;  %v168_v37 = vcombine.high %v144_v35, %v144_v35  ;;  %v175_v38 = vrot.slane %v144_v35, %v6840_v30  ;;  %v6037_v41 = vld [vmem:[#allocation8 + $0x88] sm:$0xff]   ;;  %v6038_v43 = vld [vmem:[#allocation8 + $0x140] sm:$0xff]   ;;  %v6041_v49 = vld [vmem:[#allocation8 + $0x90] sm:$0xff]  }
  0xa0   :  { %5938 = vmatprep.subr.bf16.mxu0 %v6653_v1  ;;  %5390 = vmatpush3.bf16.msra.mxu1 %v6018_v10  ;;  %v6039_v45 = vld [vmem:[#allocation8 + $0x100] sm:$0xff]   ;;  %v6042_v51 = vld [vmem:[#allocation8 + $0x148] sm:$0xff]   ;;  %v6044_v53 = vld [vmem:[#allocation8 + $0xd8] sm:$0xff]  }
  0xa1   :  { %5391 = vmatprep.subr.bf16.mxu1 %v6020_v12  ;;  %v183_v40 = vcombine.high %v175_v38, %v175_v38  ;;  %v6845_v42 = vrot.slane %v168_v37, %v6840_v30  ;;  %v420_v47 = vpack.c.bf16 %v175_v38, %v175_v38  ;;  %v6043_v52 = vld [vmem:[#allocation8 + $0x108] sm:$0xff]   ;;  %v6045_v54 = vld [vmem:[#allocation8 + $0x98] sm:$0xff]   ;;  %v6046_v55 = vld [vmem:[#allocation8 + $0x150] sm:$0xff]  }
  0xa2   :  { %v6047_v56 = vld [vmem:[#allocation8 + $0x110] sm:$0xff]   ;;  %v6048_v57 = vld [vmem:[#allocation8 + $0xe0] sm:$0xff]   ;;  %v6050_v59 = vld [vmem:[#allocation8 + $0x158] sm:$0xff]  }
  0xa3   :  { %5939 = vmatpush3.bf16.msra.mxu0 %v6019_v11  ;;  %v421_v44 = vpack.c.bf16 %v183_v40, %v183_v40  ;;  %v184_v46 = vcombine.high %v6845_v42, %v6845_v42  ;;  %v6049_v58 = vld [vmem:[#allocation8 + $0xa0] sm:$0xff]   ;;  %v6051_v60 = vld [vmem:[#allocation8 + $0x118] sm:$0xff]   ;;  %v6052_v61 = vld [vmem:[#allocation8 + $0xe8] sm:$0xff]   ;;  %v422_v12 = vpack.c.bf16 %v6845_v42, %v6845_v42 }
  0xa4   :  { %5940 = vmatprep.subr.bf16.mxu0 %v6653_v1  ;;  %5392 = vmatpush3.bf16.msra.mxu1 %v6021_v13  ;;  %v6053_v62 = vld [vmem:[#allocation8 + $0xa8] sm:$0xff]   ;;  %v6054_v63 = vld [vmem:[#allocation8 + $0x160] sm:$0xff]   ;;  %v6056_v2 = vld [vmem:[#allocation8 + $0xf0] sm:$0xff]  }
  0xa5   :  { %5393 = vmatprep.subr.bf16.mxu1 %v6023_v14  ;;  %3674 = vmatprep.mubr.bf16.mxu1 %v421_v44  ;;  %v423_v50 = vpack.c.bf16 %v184_v46, %v184_v46  ;;  %v6055_v0 = vld [vmem:[#allocation8 + $0x120] sm:$0xff]   ;;  %v6057_v3 = vld [vmem:[#allocation8 + $0xb0] sm:$0xff]   ;;  %v6058_v4 = vld [vmem:[#allocation8 + $0x168] sm:$0xff]  }
  0xa6   :  { %v6059_v5 = vld [vmem:[#allocation8 + $0x128] sm:$0xff]   ;;  %v6060_v6 = vld [vmem:[#allocation8 + $0xf8] sm:$0xff]   ;;  %v6062_v8 = vld [vmem:[#allocation8 + $0x170] sm:$0xff]  }
  0xa7   :  { %5941 = vmatpush3.bf16.msra.mxu0 %v6022_v15  ;;  %v6061_v7 = vld [vmem:[#allocation8 + $0xb8] sm:$0xff]   ;;  %v6063_v9 = vld [vmem:[#allocation8 + $0x130] sm:$0xff]   ;;  %v6064_v10 = vld [vmem:[#allocation8 + $0x1c0] sm:$0xff]  }
  0xa8   :  { %5942 = vmatprep.subr.bf16.mxu0 %v6653_v1  ;;  %5394 = vmatpush3.bf16.msra.mxu1 %v6024_v19  ;;  %v6065_v11 = vld [vmem:[#allocation8 + $0x178] sm:$0xff]   ;;  %v6066_v13 = vld [vmem:[#allocation8 + $0x180] sm:$0xff]   ;;  %v6068_v19 = vld [vmem:[#allocation8 + $0x1c8] sm:$0xff]  }
  0xa9   :  { %5395 = vmatprep.subr.bf16.mxu1 %v6026_v20  ;;  %v145_v14 = vld [vmem:[#allocation3 + $0x8] sm:$0xff]  ;;  %v6067_v15 = vld [vmem:[#allocation8 + $0x138] sm:$0xff]   ;;  %v6079_v37 = vld [vmem:[#allocation8 + $0x210] sm:$0xff]  }
  0xaa   :  { %v192_v16 = vrot.slane %v145_v14, %v6840_v30  ;;  %v185_v17 = vcombine.high %v145_v14, %v145_v14  ;;  %v6070_v23 = vld [vmem:[#allocation8 + $0x240] sm:$0xff]   ;;  %v6077_v35 = vld [vmem:[#allocation8 + $0x198] sm:$0xff]   ;;  %v6084_v42 = vld [vmem:[#allocation8 + $0x1e8] sm:$0xff]  }
  0xab   :  { %5943 = vmatpush3.bf16.msra.mxu0 %v6025_v21  ;;  %v6069_v21 = vld [vmem:[#allocation8 + $0x188] sm:$0xff]   ;;  %v6080_v38 = vld [vmem:[#allocation8 + $0x1e0] sm:$0xff]   ;;  %v6082_v40 = vld [vmem:[#allocation8 + $0x258] sm:$0xff]  }
  0xac   :  { %5944 = vmatprep.subr.bf16.mxu0 %v6653_v1  ;;  %5396 = vmatpush3.bf16.msra.mxu1 %v6027_v25  ;;  %v200_v20 = vcombine.high %v192_v16, %v192_v16  ;;  %v6853_v22 = vrot.slane %v185_v17, %v6840_v30  ;;  %v6071_v25 = vld [vmem:[#allocation8 + $0x200] sm:$0xff]   ;;  %v424_v27 = vpack.c.bf16 %v192_v16, %v192_v16  ;;  %v6088_v46 = vld [vmem:[#allocation8 + $0x1f0] sm:$0xff]   ;;  %v6110_v14 = vld [vmem:[#allocation8 + $0x298] sm:$0xff]  }
  0xad   :  { %5397 = vmatprep.subr.bf16.mxu1 %v6029_v26  ;;  %v6086_v44 = vld [vmem:[#allocation8 + $0x260] sm:$0xff]   ;;  %v6112_v16 = vld [vmem:[#allocation8 + $0x310] sm:$0xff]  }
  0xae   :  { %v425_v24 = vpack.c.bf16 %v200_v20, %v200_v20  ;;  %v201_v26 = vcombine.high %v6853_v22, %v6853_v22  ;;  %v6113_v17 = vld [vmem:[#allocation8 + $0x2e0] sm:$0xff]   ;;  %v6115_v20 = vld [vmem:[#allocation8 + $0x358] sm:$0xff]  }
  0xaf   :  { %5945 = vmatpush3.bf16.msra.mxu0 %v1296_v31 }
  0xb0   :  { %5407 = vmatprep.subr.bf16.mxu0 %v6031_v29  ;;  %5398 = vmatpush3.bf16.msra.mxu1 %v6030_v28  ;;  %v6072_v28 = vld [vmem:[#allocation8 + $0x1d0] sm:$0xff]   ;;  %v427_v31 = vpack.c.bf16 %v201_v26, %v201_v26 }
  0xb1   :  { %5399 = vmatprep.subr.bf16.mxu1 %v6032_v32  ;;  %v6073_v29 = vld [vmem:[#allocation8 + $0x190] sm:$0xff]   ;;  %v6074_v32 = vld [vmem:[#allocation8 + $0x248] sm:$0xff]  }
  0xb2   :  { %5947 = vmatmul.mubr.msk.bf16.vlgmr.msra.gmra.mrb[0].mxu0 %vm1290_vm2, %v1237_v34  ;;  %v6076_v34 = vld [vmem:[#allocation8 + $0x1d8] sm:$0xff]   ;;  %v6121_v26 = vld [vmem:[#allocation8 + $0x2f0] sm:$0xff]  }
  0xb3   :  { %5408 = vmatpush3.bf16.msra.mxu0 %v6033_v33  ;;  %3714 = vmatprep.mubr.bf16.mxu0 %v423_v50  ;;  %v6075_v33 = vld [vmem:[#allocation8 + $0x208] sm:$0xff]   ;;  %v6092_v50 = vld [vmem:[#allocation8 + $0x1f8] sm:$0xff]  }
  0xb4   :  { %5409 = vmatprep.subr.bf16.mxu0 %v6036_v39  ;;  %5400 = vmatpush3.bf16.msra.mxu1 %v6034_v36  ;;  %v6078_v36 = vld [vmem:[#allocation8 + $0x250] sm:$0xff]   ;;  %v6081_v39 = vld [vmem:[#allocation8 + $0x1a0] sm:$0xff]  }
  0xb5   :  { %5429 = vmatprep.subr.bf16.mxu1 %v6038_v43  ;;  %v6085_v43 = vld [vmem:[#allocation8 + $0x1a8] sm:$0xff]  }
  0xb7   :  { %5410 = vmatpush3.bf16.msra.mxu0 %v6037_v41  ;;  %3675 = vmatmul.mubr.bf16.vlgmr.msra.gmra.mrb[0].mxu1 %v420_v47  ;;  %v6083_v41 = vld [vmem:[#allocation8 + $0x218] sm:$0xff]   ;;  %v6089_v47 = vld [vmem:[#allocation8 + $0x1b0] sm:$0xff]  }
  0xb8   :  { %5411 = vmatprep.subr.bf16.mxu0 %v6040_v48  ;;  %5430 = vmatpush3.bf16.msra.mxu1 %v6039_v45  ;;  %v6087_v45 = vld [vmem:[#allocation8 + $0x220] sm:$0xff]   ;;  %v6090_v48 = vld [vmem:[#allocation8 + $0x268] sm:$0xff]  }
  0xb9   :  { %5431 = vmatprep.subr.bf16.mxu1 %v6042_v51  ;;  %3754 = vmatprep.mubr.bf16.mxu1 %v425_v24  ;;  %v6093_v51 = vld [vmem:[#allocation8 + $0x1b8] sm:$0xff]   ;;  %v6119_v24 = vld [vmem:[#allocation8 + $0x360] sm:$0xff]  }
  0xbb   :  { %5412 = vmatpush3.bf16.msra.mxu0 %v6041_v49  ;;  %v6091_v49 = vld [vmem:[#allocation8 + $0x228] sm:$0xff]  }
  0xbc   :  { %5413 = vmatprep.subr.bf16.mxu0 %v6044_v53  ;;  %5432 = vmatpush3.bf16.msra.mxu1 %v6043_v52  ;;  %v6094_v52 = vld [vmem:[#allocation8 + $0x270] sm:$0xff]  }
  0xbd   :  { %5433 = vmatprep.subr.bf16.mxu1 %v6046_v55  ;;  %v6095_v53 = vld [vmem:[#allocation8 + $0x230] sm:$0xff]   ;;  %v6098_v55 = vld [vmem:[#allocation8 + $0x278] sm:$0xff]  }
  0xbf   :  { %5414 = vmatpush3.bf16.msra.mxu0 %v6045_v54  ;;  %v6097_v54 = vld [vmem:[#allocation8 + $0x2c0] sm:$0xff]  }
  0xc0   :  { %5415 = vmatprep.subr.bf16.mxu0 %v6048_v57  ;;  %5434 = vmatpush3.bf16.msra.mxu1 %v6047_v56  ;;  %v426_v56 = vpack.c.bf16 %v6853_v22, %v6853_v22  ;;  %v6099_v57 = vld [vmem:[#allocation8 + $0x280] sm:$0xff]   ;;  %v6117_v22 = vld [vmem:[#allocation8 + $0x2e8] sm:$0xff]  }
  0xc1   :  { %5435 = vmatprep.subr.bf16.mxu1 %v6050_v59  ;;  %v6100_v59 = vld [vmem:[#allocation8 + $0x238] sm:$0xff]  }
  0xc3   :  { %5416 = vmatpush3.bf16.msra.mxu0 %v6049_v58  ;;  %v146_v58 = vld [vmem:[#allocation3 + $0x10] sm:$0xff] }
  0xc4   :  { %5417 = vmatprep.subr.bf16.mxu0 %v6052_v61  ;;  %5436 = vmatpush3.bf16.msra.mxu1 %v6051_v60  ;;  %v209_v60 = vrot.slane %v146_v58, %v6840_v30  ;;  %v202_v61 = vcombine.high %v146_v58, %v146_v58  ;;  %v6143_v58 = vld [vmem:[#allocation8 + $0x398] sm:$0xff]  }
  0xc5   :  { %5437 = vmatprep.subr.bf16.mxu1 %v6054_v63 }
  0xc6   :  { %v217_v63 = vcombine.high %v209_v60, %v209_v60 }
  0xc7   :  { %5418 = vmatpush3.bf16.msra.mxu0 %v6053_v62  ;;  %v6101_v62 = vld [vmem:[#allocation8 + $0x2c8] sm:$0xff]  }
  0xc8   :  { %5419 = vmatprep.subr.bf16.mxu0 %v6056_v2  ;;  %5438 = vmatpush3.bf16.msra.mxu1 %v6055_v0  ;;  %v6102_v0 = vld [vmem:[#allocation8 + $0x288] sm:$0xff]   ;;  %v6861_v2 = vrot.slane %v202_v61, %v6840_v30  ;;  %v6146_v61 = vld [vmem:[#allocation8 + $0x3e0] sm:$0xff]  }
  0xc9   :  { %5439 = vmatprep.subr.bf16.mxu1 %v6058_v4  ;;  %v429_v4 = vpack.c.bf16 %v217_v63, %v217_v63  ;;  %v6148_v63 = vld [vmem:[#allocation8 + $0x458] sm:$0xff]  }
  0xcb   :  { %5420 = vmatpush3.bf16.msra.mxu0 %v6057_v3  ;;  %v6103_v3 = vld [vmem:[#allocation8 + $0x340] sm:$0xff]  }
  0xcc   :  { %5421 = vmatprep.subr.bf16.mxu0 %v6060_v6  ;;  %5440 = vmatpush3.bf16.msra.mxu1 %v6059_v5  ;;  %v6104_v5 = vld [vmem:[#allocation8 + $0x300] sm:$0xff]   ;;  %v218_v6 = vcombine.high %v6861_v2, %v6861_v2 }
  0xcd   :  { %5441 = vmatprep.subr.bf16.mxu1 %v6062_v8  ;;  %v6105_v8 = vld [vmem:[#allocation8 + $0x2d0] sm:$0xff]  }
  0xcf   :  { %5422 = vmatpush3.bf16.msra.mxu0 %v6061_v7  ;;  %v428_v7 = vpack.c.bf16 %v209_v60, %v209_v60  ;;  %v6145_v60 = vld [vmem:[#allocation8 + $0x410] sm:$0xff]  }
  0xd0   :  { %5451 = vmatprep.subr.bf16.mxu0 %v6064_v10  ;;  %5442 = vmatpush3.bf16.msra.mxu1 %v6063_v9  ;;  %v6106_v9 = vld [vmem:[#allocation8 + $0x290] sm:$0xff]   ;;  %v431_v10 = vpack.c.bf16 %v218_v6, %v218_v6 }
  0xd1   :  { %5443 = vmatprep.subr.bf16.mxu1 %v6065_v11  ;;  %v6107_v11 = vld [vmem:[#allocation8 + $0x348] sm:$0xff]   ;;  %v6154_v6 = vld [vmem:[#allocation8 + $0x3f0] sm:$0xff]  }
  0xd2   :  { %3715 = vmatmul.mubr.bf16.vlgmr.msra.gmra.mrb[4].mxu0 %v422_v12  ;;  %v6108_v12 = vld [vmem:[#allocation8 + $0x308] sm:$0xff]  }
  0xd3   :  { %5452 = vmatpush3.bf16.msra.mxu0 %v6066_v13  ;;  %3794 = vmatprep.mubr.bf16.mxu0 %v427_v31  ;;  %v6109_v13 = vld [vmem:[#allocation8 + $0x2d8] sm:$0xff]  }
  0xd4   :  { %5453 = vmatprep.subr.bf16.mxu0 %v6068_v19  ;;  %5444 = vmatpush3.bf16.msra.mxu1 %v6067_v15  ;;  %v6111_v15 = vld [vmem:[#allocation8 + $0x350] sm:$0xff]   ;;  %v6114_v19 = vld [vmem:[#allocation8 + $0x2a0] sm:$0xff]   ;;  %v6125_v31 = vld [vmem:[#allocation8 + $0x2f8] sm:$0xff]  }
  0xd5   :  { %5473 = vmatprep.subr.bf16.mxu1 %v6070_v23  ;;  %v6118_v23 = vld [vmem:[#allocation8 + $0x2a8] sm:$0xff]  }
  0xd7   :  { %5454 = vmatpush3.bf16.msra.mxu0 %v6069_v21  ;;  %3755 = vmatmul.mubr.bf16.vlgmr.msra.gmra.mrb[4].mxu1 %v424_v27  ;;  %v6116_v21 = vld [vmem:[#allocation8 + $0x318] sm:$0xff]   ;;  %v6122_v27 = vld [vmem:[#allocation8 + $0x2b0] sm:$0xff]  }
  0xd8   :  { %5455 = vmatprep.subr.bf16.mxu0 %v6072_v28  ;;  %5474 = vmatpush3.bf16.msra.mxu1 %v6071_v25  ;;  %v6120_v25 = vld [vmem:[#allocation8 + $0x320] sm:$0xff]   ;;  %v6123_v28 = vld [vmem:[#allocation8 + $0x368] sm:$0xff]  }
  0xd9   :  { %5475 = vmatprep.subr.bf16.mxu1 %v6074_v32  ;;  %3834 = vmatprep.mubr.bf16.mxu1 %v429_v4  ;;  %v6126_v32 = vld [vmem:[#allocation8 + $0x2b8] sm:$0xff]   ;;  %v6152_v4 = vld [vmem:[#allocation8 + $0x460] sm:$0xff]  }
  0xdb   :  { %5456 = vmatpush3.bf16.msra.mxu0 %v6073_v29  ;;  %v6124_v29 = vld [vmem:[#allocation8 + $0x328] sm:$0xff]  }
  0xdc   :  { %5457 = vmatprep.subr.bf16.mxu0 %v6076_v34  ;;  %5476 = vmatpush3.bf16.msra.mxu1 %v6075_v33  ;;  %v6127_v33 = vld [vmem:[#allocation8 + $0x370] sm:$0xff]  }
  0xdd   :  { %5477 = vmatprep.subr.bf16.mxu1 %v6078_v36  ;;  %v6128_v34 = vld [vmem:[#allocation8 + $0x330] sm:$0xff]   ;;  %v6131_v36 = vld [vmem:[#allocation8 + $0x378] sm:$0xff]  }
  0xdf   :  { %5458 = vmatpush3.bf16.msra.mxu0 %v6077_v35  ;;  %v6130_v35 = vld [vmem:[#allocation8 + $0x3c0] sm:$0xff]  }
  0xe0   :  { %5459 = vmatprep.subr.bf16.mxu0 %v6080_v38  ;;  %5478 = vmatpush3.bf16.msra.mxu1 %v6079_v37  ;;  %v430_v37 = vpack.c.bf16 %v6861_v2, %v6861_v2  ;;  %v6132_v38 = vld [vmem:[#allocation8 + $0x380] sm:$0xff]   ;;  %v6150_v2 = vld [vmem:[#allocation8 + $0x3e8] sm:$0xff]  }
  0xe1   :  { %5479 = vmatprep.subr.bf16.mxu1 %v6082_v40  ;;  %v147_v40 = vld [vmem:[#allocation3 + $0x18] sm:$0xff] }
  0xe3   :  { %5460 = vmatpush3.bf16.msra.mxu0 %v6081_v39  ;;  %v6133_v39 = vld [vmem:[#allocation8 + $0x338] sm:$0xff]  }
  0xe4   :  { %5461 = vmatprep.subr.bf16.mxu0 %v6084_v42  ;;  %5480 = vmatpush3.bf16.msra.mxu1 %v6083_v41  ;;  %v226_v41 = vrot.slane %v147_v40, %v6840_v30  ;;  %v6134_v42 = vld [vmem:[#allocation8 + $0x3c8] sm:$0xff]  }
  0xe5   :  { %5481 = vmatprep.subr.bf16.mxu1 %v6086_v44  ;;  %v6135_v44 = vld [vmem:[#allocation8 + $0x388] sm:$0xff]  }
  0xe7   :  { %5462 = vmatpush3.bf16.msra.mxu0 %v6085_v43  ;;  %v219_v43 = vcombine.high %v147_v40, %v147_v40  ;;  %v6177_v40 = vld [vmem:[#allocation8 + $0x550] sm:$0xff]  }
  0xe8   :  { %5463 = vmatprep.subr.bf16.mxu0 %v6088_v46  ;;  %5482 = vmatpush3.bf16.msra.mxu1 %v6087_v45  ;;  %v234_v45 = vcombine.high %v226_v41, %v226_v41  ;;  %v6136_v46 = vld [vmem:[#allocation8 + $0x440] sm:$0xff]  }
  0xe9   :  { %5483 = vmatprep.subr.bf16.mxu1 %v6090_v48  ;;  %v6137_v48 = vld [vmem:[#allocation8 + $0x400] sm:$0xff]  }
  0xeb   :  { %5464 = vmatpush3.bf16.msra.mxu0 %v6089_v47  ;;  %v6869_v47 = vrot.slane %v219_v43, %v6840_v30  ;;  %v6180_v43 = vld [vmem:[#allocation8 + $0x4a0] sm:$0xff]  }
  0xec   :  { %5465 = vmatprep.subr.bf16.mxu0 %v6092_v50  ;;  %5484 = vmatpush3.bf16.msra.mxu1 %v6091_v49  ;;  %v433_v49 = vpack.c.bf16 %v234_v45, %v234_v45  ;;  %v432_v50 = vpack.c.bf16 %v226_v41, %v226_v41  ;;  %v6178_v41 = vld [vmem:[#allocation8 + $0x510] sm:$0xff]   ;;  %v6182_v45 = vld [vmem:[#allocation8 + $0x518] sm:$0xff]  }
  0xed   :  { %5485 = vmatprep.subr.bf16.mxu1 %v6094_v52  ;;  %v235_v52 = vcombine.high %v6869_v47, %v6869_v47 }
  0xef   :  { %5466 = vmatpush3.bf16.msra.mxu0 %v6093_v51  ;;  %v6138_v51 = vld [vmem:[#allocation8 + $0x3d0] sm:$0xff]  }
  0xf0   :  { %5495 = vmatprep.subr.bf16.mxu0 %v6097_v54  ;;  %5486 = vmatpush3.bf16.msra.mxu1 %v6095_v53  ;;  %v6139_v53 = vld [vmem:[#allocation8 + $0x390] sm:$0xff]   ;;  %v6140_v54 = vld [vmem:[#allocation8 + $0x448] sm:$0xff]  }
  0xf1   :  { %5487 = vmatprep.subr.bf16.mxu1 %v6098_v55  ;;  %v435_v55 = vpack.c.bf16 %v235_v52, %v235_v52  ;;  %v6189_v52 = vld [vmem:[#allocation8 + $0x568] sm:$0xff]  }
  0xf2   :  { %3795 = vmatmul.mubr.bf16.vlgmr.msra.gmra.mrb[8].mxu0 %v426_v56  ;;  %v6141_v56 = vld [vmem:[#allocation8 + $0x408] sm:$0xff]  }
  0xf3   :  { %5496 = vmatpush3.bf16.msra.mxu0 %v6099_v57  ;;  %3874 = vmatprep.mubr.bf16.mxu0 %v431_v10  ;;  %v6142_v57 = vld [vmem:[#allocation8 + $0x3d8] sm:$0xff]  }
  0xf4   :  { %5497 = vmatprep.subr.bf16.mxu0 %v6101_v62  ;;  %5488 = vmatpush3.bf16.msra.mxu1 %v6100_v59  ;;  %v6144_v59 = vld [vmem:[#allocation8 + $0x450] sm:$0xff]   ;;  %v6147_v62 = vld [vmem:[#allocation8 + $0x3a0] sm:$0xff]   ;;  %v6158_v10 = vld [vmem:[#allocation8 + $0x3f8] sm:$0xff]  }
  0xf5   :  { %5517 = vmatprep.subr.bf16.mxu1 %v6103_v3  ;;  %v6151_v3 = vld [vmem:[#allocation8 + $0x3a8] sm:$0xff]  }
  0xf7   :  { %5498 = vmatpush3.bf16.msra.mxu0 %v6102_v0  ;;  %3835 = vmatmul.mubr.bf16.vlgmr.msra.gmra.mrb[8].mxu1 %v428_v7  ;;  %v6149_v0 = vld [vmem:[#allocation8 + $0x418] sm:$0xff]   ;;  %v6155_v7 = vld [vmem:[#allocation8 + $0x3b0] sm:$0xff]  }
  0xf8   :  { %5499 = vmatprep.subr.bf16.mxu0 %v6105_v8  ;;  %5518 = vmatpush3.bf16.msra.mxu1 %v6104_v5  ;;  %v6153_v5 = vld [vmem:[#allocation8 + $0x420] sm:$0xff]   ;;  %v6156_v8 = vld [vmem:[#allocation8 + $0x468] sm:$0xff]  }
  0xf9   :  { %5519 = vmatprep.subr.bf16.mxu1 %v6107_v11  ;;  %3914 = vmatprep.mubr.bf16.mxu1 %v433_v49  ;;  %v6159_v11 = vld [vmem:[#allocation8 + $0x3b8] sm:$0xff]   ;;  %v6186_v49 = vld [vmem:[#allocation8 + $0x520] sm:$0xff]  }
  0xfb   :  { %5500 = vmatpush3.bf16.msra.mxu0 %v6106_v9  ;;  %v6157_v9 = vld [vmem:[#allocation8 + $0x428] sm:$0xff]  }
  0xfc   :  { %5501 = vmatprep.subr.bf16.mxu0 %v6109_v13  ;;  %5520 = vmatpush3.bf16.msra.mxu1 %v6108_v12  ;;  %v6160_v12 = vld [vmem:[#allocation8 + $0x470] sm:$0xff]  }
  0xfd   :  { %5521 = vmatprep.subr.bf16.mxu1 %v6111_v15  ;;  %v6161_v13 = vld [vmem:[#allocation8 + $0x430] sm:$0xff]   ;;  %v6164_v15 = vld [vmem:[#allocation8 + $0x478] sm:$0xff]  }
  0xff   :  { %5502 = vmatpush3.bf16.msra.mxu0 %v6110_v14  ;;  %v6163_v14 = vld [vmem:[#allocation8 + $0x4c0] sm:$0xff]  }
 0x100   :  { %5503 = vmatprep.subr.bf16.mxu0 %v6113_v17  ;;  %5522 = vmatpush3.bf16.msra.mxu1 %v6112_v16  ;;  %v434_v16 = vpack.c.bf16 %v6869_v47, %v6869_v47  ;;  %v6165_v17 = vld [vmem:[#allocation8 + $0x480] sm:$0xff]   ;;  %v6184_v47 = vld [vmem:[#allocation8 + $0x4a8] sm:$0xff]  }
 0x101   :  { %5523 = vmatprep.subr.bf16.mxu1 %v6115_v20  ;;  %v148_v20 = vld [vmem:[#allocation3 + $0x20] sm:$0xff] }
 0x103   :  { %5504 = vmatpush3.bf16.msra.mxu0 %v6114_v19  ;;  %v6166_v19 = vld [vmem:[#allocation8 + $0x438] sm:$0xff]  }
 0x104   :  { %5505 = vmatprep.subr.bf16.mxu0 %v6117_v22  ;;  %5524 = vmatpush3.bf16.msra.mxu1 %v6116_v21  ;;  %v243_v21 = vrot.slane %v148_v20, %v6840_v30  ;;  %v6167_v22 = vld [vmem:[#allocation8 + $0x4c8] sm:$0xff]  }
 0x105   :  { %5525 = vmatprep.subr.bf16.mxu1 %v6119_v24  ;;  %v6168_v24 = vld [vmem:[#allocation8 + $0x488] sm:$0xff]  }
 0x107   :  { %5506 = vmatpush3.bf16.msra.mxu0 %v6118_v23  ;;  %v236_v23 = vcombine.high %v148_v20, %v148_v20  ;;  %v6210_v20 = vld [vmem:[#allocation8 + $0x650] sm:$0xff]  }
 0x108   :  { %5507 = vmatprep.subr.bf16.mxu0 %v6121_v26  ;;  %5526 = vmatpush3.bf16.msra.mxu1 %v6120_v25  ;;  %v251_v25 = vcombine.high %v243_v21, %v243_v21  ;;  %v6169_v26 = vld [vmem:[#allocation8 + $0x540] sm:$0xff]  }
 0x109   :  { %5527 = vmatprep.subr.bf16.mxu1 %v6123_v28  ;;  %v6170_v28 = vld [vmem:[#allocation8 + $0x500] sm:$0xff]  }
 0x10b   :  { %5508 = vmatpush3.bf16.msra.mxu0 %v6122_v27  ;;  %v6877_v27 = vrot.slane %v236_v23, %v6840_v30  ;;  %v6213_v23 = vld [vmem:[#allocation8 + $0x5a0] sm:$0xff]  }
 0x10c   :  { %5509 = vmatprep.subr.bf16.mxu0 %v6125_v31  ;;  %5528 = vmatpush3.bf16.msra.mxu1 %v6124_v29  ;;  %v437_v29 = vpack.c.bf16 %v251_v25, %v251_v25  ;;  %v436_v31 = vpack.c.bf16 %v243_v21, %v243_v21  ;;  %v6211_v21 = vld [vmem:[#allocation8 + $0x610] sm:$0xff]   ;;  %v6215_v25 = vld [vmem:[#allocation8 + $0x618] sm:$0xff]  }
 0x10d   :  { %5529 = vmatprep.subr.bf16.mxu1 %v6127_v33  ;;  %v252_v33 = vcombine.high %v6877_v27, %v6877_v27 }
 0x10f   :  { %5510 = vmatpush3.bf16.msra.mxu0 %v6126_v32  ;;  %v6171_v32 = vld [vmem:[#allocation8 + $0x4d0] sm:$0xff]  }
 0x110   :  { %5539 = vmatprep.subr.bf16.mxu0 %v6130_v35  ;;  %5530 = vmatpush3.bf16.msra.mxu1 %v6128_v34  ;;  %v6172_v34 = vld [vmem:[#allocation8 + $0x490] sm:$0xff]   ;;  %v6173_v35 = vld [vmem:[#allocation8 + $0x548] sm:$0xff]  }
 0x111   :  { %5531 = vmatprep.subr.bf16.mxu1 %v6131_v36  ;;  %v439_v36 = vpack.c.bf16 %v252_v33, %v252_v33  ;;  %v6222_v33 = vld [vmem:[#allocation8 + $0x668] sm:$0xff]  }
 0x112   :  { %3875 = vmatmul.mubr.bf16.vlgmr.msra.gmra.mrb[12].mxu0 %v430_v37  ;;  %v6174_v37 = vld [vmem:[#allocation8 + $0x508] sm:$0xff]  }
 0x113   :  { %5540 = vmatpush3.bf16.msra.mxu0 %v6132_v38  ;;  %3954 = vmatprep.mubr.bf16.mxu0 %v435_v55  ;;  %v6175_v38 = vld [vmem:[#allocation8 + $0x4d8] sm:$0xff]  }
 0x114   :  { %5541 = vmatprep.subr.bf16.mxu0 %v6134_v42  ;;  %5532 = vmatpush3.bf16.msra.mxu1 %v6133_v39  ;;  %v6176_v39 = vld [vmem:[#allocation8 + $0x498] sm:$0xff]   ;;  %v6179_v42 = vld [vmem:[#allocation8 + $0x4e0] sm:$0xff]  }
 0x115   :  { %5561 = vmatprep.subr.bf16.mxu1 %v6136_v46  ;;  %v6183_v46 = vld [vmem:[#allocation8 + $0x4e8] sm:$0xff]   ;;  %v6192_v55 = vld [vmem:[#allocation8 + $0x4b8] sm:$0xff]  }
 0x117   :  { %5542 = vmatpush3.bf16.msra.mxu0 %v6135_v44  ;;  %3915 = vmatmul.mubr.bf16.vlgmr.msra.gmra.mrb[12].mxu1 %v432_v50  ;;  %v6181_v44 = vld [vmem:[#allocation8 + $0x558] sm:$0xff]   ;;  %v6187_v50 = vld [vmem:[#allocation8 + $0x4f0] sm:$0xff]  }
 0x118   :  { %5543 = vmatprep.subr.bf16.mxu0 %v6138_v51  ;;  %5562 = vmatpush3.bf16.msra.mxu1 %v6137_v48  ;;  %v6185_v48 = vld [vmem:[#allocation8 + $0x560] sm:$0xff]   ;;  %v6188_v51 = vld [vmem:[#allocation8 + $0x4b0] sm:$0xff]  }
 0x119   :  { %5563 = vmatprep.subr.bf16.mxu1 %v6140_v54  ;;  %3994 = vmatprep.mubr.bf16.mxu1 %v437_v29  ;;  %v6191_v54 = vld [vmem:[#allocation8 + $0x4f8] sm:$0xff]   ;;  %v6219_v29 = vld [vmem:[#allocation8 + $0x620] sm:$0xff]  }
 0x11b   :  { %5544 = vmatpush3.bf16.msra.mxu0 %v6139_v53  ;;  %v6190_v53 = vld [vmem:[#allocation8 + $0x528] sm:$0xff]  }
 0x11c   :  { %5545 = vmatprep.subr.bf16.mxu0 %v6142_v57  ;;  %5564 = vmatpush3.bf16.msra.mxu1 %v6141_v56  ;;  %v6193_v56 = vld [vmem:[#allocation8 + $0x570] sm:$0xff]  }
 0x11d   :  { %5565 = vmatprep.subr.bf16.mxu1 %v6144_v59  ;;  %v6194_v57 = vld [vmem:[#allocation8 + $0x530] sm:$0xff]   ;;  %v6197_v59 = vld [vmem:[#allocation8 + $0x578] sm:$0xff]  }
 0x11f   :  { %5546 = vmatpush3.bf16.msra.mxu0 %v6143_v58  ;;  %v6196_v58 = vld [vmem:[#allocation8 + $0x5c0] sm:$0xff]  }
 0x120   :  { %5547 = vmatprep.subr.bf16.mxu0 %v6146_v61  ;;  %5566 = vmatpush3.bf16.msra.mxu1 %v6145_v60  ;;  %v438_v60 = vpack.c.bf16 %v6877_v27, %v6877_v27  ;;  %v6198_v61 = vld [vmem:[#allocation8 + $0x580] sm:$0xff]   ;;  %v6217_v27 = vld [vmem:[#allocation8 + $0x5a8] sm:$0xff]  }
 0x121   :  { %5567 = vmatprep.subr.bf16.mxu1 %v6148_v63  ;;  %v149_v63 = vld [vmem:[#allocation3 + $0x28] sm:$0xff] }
 0x123   :  { %5548 = vmatpush3.bf16.msra.mxu0 %v6147_v62  ;;  %v6199_v62 = vld [vmem:[#allocation8 + $0x538] sm:$0xff]  }
 0x124   :  { %5549 = vmatprep.subr.bf16.mxu0 %v6150_v2  ;;  %5568 = vmatpush3.bf16.msra.mxu1 %v6149_v0  ;;  %v260_v0 = vrot.slane %v149_v63, %v6840_v30  ;;  %v6200_v2 = vld [vmem:[#allocation8 + $0x5c8] sm:$0xff]  }
 0x125   :  { %5569 = vmatprep.subr.bf16.mxu1 %v6152_v4  ;;  %v6201_v4 = vld [vmem:[#allocation8 + $0x588] sm:$0xff]  }
 0x127   :  { %5550 = vmatpush3.bf16.msra.mxu0 %v6151_v3  ;;  %v253_v3 = vcombine.high %v149_v63, %v149_v63  ;;  %v6243_v63 = vld [vmem:[#allocation8 + $0x750] sm:$0xff]  }
 0x128   :  { %5551 = vmatprep.subr.bf16.mxu0 %v6154_v6  ;;  %5570 = vmatpush3.bf16.msra.mxu1 %v6153_v5  ;;  %v268_v5 = vcombine.high %v260_v0, %v260_v0  ;;  %v6202_v6 = vld [vmem:[#allocation8 + $0x640] sm:$0xff]  }
 0x129   :  { %5571 = vmatprep.subr.bf16.mxu1 %v6156_v8  ;;  %v6203_v8 = vld [vmem:[#allocation8 + $0x600] sm:$0xff]  }
 0x12b   :  { %5552 = vmatpush3.bf16.msra.mxu0 %v6155_v7  ;;  %v6885_v7 = vrot.slane %v253_v3, %v6840_v30  ;;  %v6246_v3 = vld [vmem:[#allocation8 + $0x6a0] sm:$0xff]  }
 0x12c   :  { %5553 = vmatprep.subr.bf16.mxu0 %v6158_v10  ;;  %5572 = vmatpush3.bf16.msra.mxu1 %v6157_v9  ;;  %v441_v9 = vpack.c.bf16 %v268_v5, %v268_v5  ;;  %v440_v10 = vpack.c.bf16 %v260_v0, %v260_v0  ;;  %v6244_v0 = vld [vmem:[#allocation8 + $0x710] sm:$0xff]   ;;  %v6248_v5 = vld [vmem:[#allocation8 + $0x718] sm:$0xff]  }
 0x12d   :  { %5573 = vmatprep.subr.bf16.mxu1 %v6160_v12  ;;  %v269_v12 = vcombine.high %v6885_v7, %v6885_v7 }
 0x12f   :  { %5554 = vmatpush3.bf16.msra.mxu0 %v6159_v11  ;;  %v6204_v11 = vld [vmem:[#allocation8 + $0x5d0] sm:$0xff]  }
 0x130   :  { %5583 = vmatprep.subr.bf16.mxu0 %v6163_v14  ;;  %5574 = vmatpush3.bf16.msra.mxu1 %v6161_v13  ;;  %v6205_v13 = vld [vmem:[#allocation8 + $0x590] sm:$0xff]   ;;  %v6206_v14 = vld [vmem:[#allocation8 + $0x648] sm:$0xff]  }
 0x131   :  { %5575 = vmatprep.subr.bf16.mxu1 %v6164_v15  ;;  %v443_v15 = vpack.c.bf16 %v269_v12, %v269_v12 }
 0x132   :  { %3955 = vmatmul.mubr.bf16.vlgmr.msra.gmra.mrb[16].mxu0 %v434_v16  ;;  %v6207_v16 = vld [vmem:[#allocation8 + $0x608] sm:$0xff]  }
 0x133   :  { %5584 = vmatpush3.bf16.msra.mxu0 %v6165_v17  ;;  %4034 = vmatprep.mubr.bf16.mxu0 %v439_v36  ;;  %v6208_v17 = vld [vmem:[#allocation8 + $0x5d8] sm:$0xff]  }
 0x134   :  { %5585 = vmatprep.subr.bf16.mxu0 %v6167_v22  ;;  %5576 = vmatpush3.bf16.msra.mxu1 %v6166_v19  ;;  %v6209_v19 = vld [vmem:[#allocation8 + $0x598] sm:$0xff]   ;;  %v6212_v22 = vld [vmem:[#allocation8 + $0x5e0] sm:$0xff]  }
 0x135   :  { %5605 = vmatprep.subr.bf16.mxu1 %v6169_v26  ;;  %v6216_v26 = vld [vmem:[#allocation8 + $0x5e8] sm:$0xff]   ;;  %v6225_v36 = vld [vmem:[#allocation8 + $0x5b8] sm:$0xff]  }
 0x137   :  { %5586 = vmatpush3.bf16.msra.mxu0 %v6168_v24  ;;  %3995 = vmatmul.mubr.bf16.vlgmr.msra.gmra.mrb[16].mxu1 %v436_v31  ;;  %v6214_v24 = vld [vmem:[#allocation8 + $0x658] sm:$0xff]   ;;  %v6220_v31 = vld [vmem:[#allocation8 + $0x5f0] sm:$0xff]  }
 0x138   :  { %5587 = vmatprep.subr.bf16.mxu0 %v6171_v32  ;;  %5606 = vmatpush3.bf16.msra.mxu1 %v6170_v28  ;;  %v6218_v28 = vld [vmem:[#allocation8 + $0x660] sm:$0xff]   ;;  %v6221_v32 = vld [vmem:[#allocation8 + $0x5b0] sm:$0xff]  }
 0x139   :  { %5607 = vmatprep.subr.bf16.mxu1 %v6173_v35  ;;  %4074 = vmatprep.mubr.bf16.mxu1 %v441_v9  ;;  %v6224_v35 = vld [vmem:[#allocation8 + $0x5f8] sm:$0xff]   ;;  %v6252_v9 = vld [vmem:[#allocation8 + $0x720] sm:$0xff]  }
 0x13b   :  { %5588 = vmatpush3.bf16.msra.mxu0 %v6172_v34  ;;  %v6223_v34 = vld [vmem:[#allocation8 + $0x628] sm:$0xff]  }
 0x13c   :  { %5589 = vmatprep.subr.bf16.mxu0 %v6175_v38  ;;  %5608 = vmatpush3.bf16.msra.mxu1 %v6174_v37  ;;  %v6226_v37 = vld [vmem:[#allocation8 + $0x670] sm:$0xff]  }
 0x13d   :  { %5609 = vmatprep.subr.bf16.mxu1 %v6177_v40  ;;  %v6227_v38 = vld [vmem:[#allocation8 + $0x630] sm:$0xff]   ;;  %v6230_v40 = vld [vmem:[#allocation8 + $0x678] sm:$0xff]  }
 0x13f   :  { %5590 = vmatpush3.bf16.msra.mxu0 %v6176_v39  ;;  %v6229_v39 = vld [vmem:[#allocation8 + $0x6c0] sm:$0xff]  }
 0x140   :  { %5591 = vmatprep.subr.bf16.mxu0 %v6179_v42  ;;  %5610 = vmatpush3.bf16.msra.mxu1 %v6178_v41  ;;  %v442_v41 = vpack.c.bf16 %v6885_v7, %v6885_v7  ;;  %v6231_v42 = vld [vmem:[#allocation8 + $0x680] sm:$0xff]   ;;  %v6250_v7 = vld [vmem:[#allocation8 + $0x6a8] sm:$0xff]  }
 0x141   :  { %5611 = vmatprep.subr.bf16.mxu1 %v6181_v44  ;;  %v150_v44 = vld [vmem:[#allocation3 + $0x30] sm:$0xff] }
 0x143   :  { %5592 = vmatpush3.bf16.msra.mxu0 %v6180_v43  ;;  %v6232_v43 = vld [vmem:[#allocation8 + $0x638] sm:$0xff]  }
 0x144   :  { %5593 = vmatprep.subr.bf16.mxu0 %v6183_v46  ;;  %5612 = vmatpush3.bf16.msra.mxu1 %v6182_v45  ;;  %v277_v45 = vrot.slane %v150_v44, %v6840_v30  ;;  %v6233_v46 = vld [vmem:[#allocation8 + $0x6c8] sm:$0xff]  }
 0x145   :  { %5613 = vmatprep.subr.bf16.mxu1 %v6185_v48  ;;  %v6234_v48 = vld [vmem:[#allocation8 + $0x688] sm:$0xff]  }
 0x147   :  { %5594 = vmatpush3.bf16.msra.mxu0 %v6184_v47  ;;  %v270_v47 = vcombine.high %v150_v44, %v150_v44  ;;  %v6269_v44 = vld [vmem:[#allocation8 + $0x800] sm:$0xff]  }
 0x148   :  { %5595 = vmatprep.subr.bf16.mxu0 %v6187_v50  ;;  %5614 = vmatpush3.bf16.msra.mxu1 %v6186_v49  ;;  %v285_v49 = vcombine.high %v277_v45, %v277_v45  ;;  %v6235_v50 = vld [vmem:[#allocation8 + $0x740] sm:$0xff]  }
 0x149   :  { %5615 = vmatprep.subr.bf16.mxu1 %v6189_v52  ;;  %v444_v52 = vpack.c.bf16 %v277_v45, %v277_v45 }
 0x14b   :  { %5596 = vmatpush3.bf16.msra.mxu0 %v6188_v51  ;;  %v6893_v51 = vrot.slane %v270_v47, %v6840_v30 }
 0x14c   :  { %5597 = vmatprep.subr.bf16.mxu0 %v6191_v54  ;;  %5616 = vmatpush3.bf16.msra.mxu1 %v6190_v53  ;;  %v6236_v53 = vld [vmem:[#allocation8 + $0x700] sm:$0xff]   ;;  %v445_v54 = vpack.c.bf16 %v285_v49, %v285_v49  ;;  %v6272_v49 = vld [vmem:[#allocation8 + $0x848] sm:$0xff]  }
 0x14d   :  { %5617 = vmatprep.subr.bf16.mxu1 %v6193_v56  ;;  %v286_v56 = vcombine.high %v6893_v51, %v6893_v51 }
 0x14f   :  { %5598 = vmatpush3.bf16.msra.mxu0 %v6192_v55  ;;  %v6237_v55 = vld [vmem:[#allocation8 + $0x6d0] sm:$0xff]  }
 0x150   :  { %5627 = vmatprep.subr.bf16.mxu0 %v6196_v58  ;;  %5618 = vmatpush3.bf16.msra.mxu1 %v6194_v57  ;;  %v6238_v57 = vld [vmem:[#allocation8 + $0x690] sm:$0xff]   ;;  %v6239_v58 = vld [vmem:[#allocation8 + $0x748] sm:$0xff]  }
 0x151   :  { %5619 = vmatprep.subr.bf16.mxu1 %v6197_v59  ;;  %v447_v59 = vpack.c.bf16 %v286_v56, %v286_v56  ;;  %v6278_v56 = vld [vmem:[#allocation8 + $0x7e0] sm:$0xff]  }
 0x152   :  { %4035 = vmatmul.mubr.bf16.vlgmr.msra.gmra.mrb[20].mxu0 %v438_v60  ;;  %v6240_v60 = vld [vmem:[#allocation8 + $0x708] sm:$0xff]  }
 0x153   :  { %5628 = vmatpush3.bf16.msra.mxu0 %v6198_v61  ;;  %4114 = vmatprep.mubr.bf16.mxu0 %v443_v15  ;;  %v6241_v61 = vld [vmem:[#allocation8 + $0x6d8] sm:$0xff]   ;;  %v6255_v15 = vld [vmem:[#allocation8 + $0x768] sm:$0xff]  }
 0x154   :  { %5629 = vmatprep.subr.bf16.mxu0 %v6200_v2  ;;  %5620 = vmatpush3.bf16.msra.mxu1 %v6199_v62  ;;  %v6242_v62 = vld [vmem:[#allocation8 + $0x698] sm:$0xff]   ;;  %v6245_v2 = vld [vmem:[#allocation8 + $0x6e0] sm:$0xff]  }
 0x155   :  { %5649 = vmatprep.subr.bf16.mxu1 %v6202_v6  ;;  %v6249_v6 = vld [vmem:[#allocation8 + $0x6e8] sm:$0xff]  }
 0x157   :  { %5630 = vmatpush3.bf16.msra.mxu0 %v6201_v4  ;;  %4075 = vmatmul.mubr.bf16.vlgmr.msra.gmra.mrb[20].mxu1 %v440_v10  ;;  %v6247_v4 = vld [vmem:[#allocation8 + $0x758] sm:$0xff]  }
 0x158   :  { %5631 = vmatprep.subr.bf16.mxu0 %v6204_v11  ;;  %5650 = vmatpush3.bf16.msra.mxu1 %v6203_v8  ;;  %v6251_v8 = vld [vmem:[#allocation8 + $0x760] sm:$0xff]   ;;  %v6253_v11 = vld [vmem:[#allocation8 + $0x6f0] sm:$0xff]  }
 0x159   :  { %5651 = vmatprep.subr.bf16.mxu1 %v6206_v14  ;;  %4154 = vmatprep.mubr.bf16.mxu1 %v445_v54  ;;  %v6276_v54 = vld [vmem:[#allocation8 + $0x850] sm:$0xff]  }
 0x15b   :  { %5632 = vmatpush3.bf16.msra.mxu0 %v6205_v13  ;;  %v6254_v13 = vld [vmem:[#allocation8 + $0x6b0] sm:$0xff]  }
 0x15c   :  { %5633 = vmatprep.subr.bf16.mxu0 %v6208_v17  ;;  %5652 = vmatpush3.bf16.msra.mxu1 %v6207_v16  ;;  %v6256_v17 = vld [vmem:[#allocation8 + $0x728] sm:$0xff]  }
 0x15d   :  { %5653 = vmatprep.subr.bf16.mxu1 %v6210_v20  ;;  %v6258_v20 = vld [vmem:[#allocation8 + $0x6b8] sm:$0xff]  }
 0x15f   :  { %5634 = vmatpush3.bf16.msra.mxu0 %v6209_v19  ;;  %v6257_v19 = vld [vmem:[#allocation8 + $0x6f8] sm:$0xff]  }
 0x160   :  { %5635 = vmatprep.subr.bf16.mxu0 %v6212_v22  ;;  %5654 = vmatpush3.bf16.msra.mxu1 %v6211_v21  ;;  %v6259_v22 = vld [vmem:[#allocation8 + $0x770] sm:$0xff]  }
 0x161   :  { %5655 = vmatprep.subr.bf16.mxu1 %v6214_v24  ;;  %v6260_v24 = vld [vmem:[#allocation8 + $0x730] sm:$0xff]  }
 0x163   :  { %5636 = vmatpush3.bf16.msra.mxu0 %v6213_v23 }
 0x164   :  { %5637 = vmatprep.subr.bf16.mxu0 %v6216_v26  ;;  %5656 = vmatpush3.bf16.msra.mxu1 %v6215_v25  ;;  %v6262_v26 = vld [vmem:[#allocation8 + $0x7c0] sm:$0xff]  }
 0x165   :  { %5657 = vmatprep.subr.bf16.mxu1 %v6218_v28  ;;  %v446_v28 = vpack.c.bf16 %v6893_v51, %v6893_v51  ;;  %v6273_v51 = vld [vmem:[#allocation8 + $0x808] sm:$0xff]  }
 0x167   :  { %5638 = vmatpush3.bf16.msra.mxu0 %v6217_v27 }
 0x168   :  { %5639 = vmatprep.subr.bf16.mxu0 %v6220_v31  ;;  %5658 = vmatpush3.bf16.msra.mxu1 %v6219_v29  ;;  %v6263_v29 = vld [vmem:[#allocation8 + $0x778] sm:$0xff]  }
 0x169   :  { %5659 = vmatprep.subr.bf16.mxu1 %v6222_v33  ;;  %v6264_v33 = vld [vmem:[#allocation8 + $0x780] sm:$0xff]  }
 0x16b   :  { %5640 = vmatpush3.bf16.msra.mxu0 %v6221_v32 }
 0x16c   :  { %5641 = vmatprep.subr.bf16.mxu0 %v6224_v35  ;;  %5660 = vmatpush3.bf16.msra.mxu1 %v6223_v34  ;;  %v6265_v34 = vld [vmem:[#allocation8 + $0x738] sm:$0xff]  }
 0x16d   :  { %5661 = vmatprep.subr.bf16.mxu1 %v6226_v37  ;;  %v151_v35 = vld [vmem:[#allocation3 + $0x38] sm:$0xff]  ;;  %v6266_v37 = vld [vmem:[#allocation8 + $0x7c8] sm:$0xff]  }
 0x16f   :  { %5642 = vmatpush3.bf16.msra.mxu0 %v6225_v36  ;;  %v294_v36 = vrot.slane %v151_v35, %v6840_v30 }
 0x170   :  { %5671 = vmatprep.subr.bf16.mxu0 %v6229_v39  ;;  %5662 = vmatpush3.bf16.msra.mxu1 %v6227_v38  ;;  %v287_v38 = vcombine.high %v151_v35, %v151_v35  ;;  %v6267_v39 = vld [vmem:[#allocation8 + $0x788] sm:$0xff]  }
 0x171   :  { %5663 = vmatprep.subr.bf16.mxu1 %v6230_v40  ;;  %v302_v40 = vcombine.high %v294_v36, %v294_v36 }
 0x172   :  { %4115 = vmatmul.mubr.bf16.vlgmr.msra.gmra.mrb[24].mxu0 %v442_v41  ;;  %v6268_v41 = vld [vmem:[#allocation8 + $0x840] sm:$0xff]  }
 0x173   :  { %5672 = vmatpush3.bf16.msra.mxu0 %v6231_v42  ;;  %4194 = vmatprep.mubr.bf16.mxu0 %v447_v59  ;;  %v6903_v42 = vrot.slane %v287_v38, %v6840_v30  ;;  %v449_v45 = vpack.c.bf16 %v302_v40, %v302_v40  ;;  %v6281_v59 = vld [vmem:[#allocation8 + $0x818] sm:$0xff]  }
 0x174   :  { %5673 = vmatprep.subr.bf16.mxu0 %v6233_v46  ;;  %5664 = vmatpush3.bf16.msra.mxu1 %v6232_v43  ;;  %v448_v43 = vpack.c.bf16 %v294_v36, %v294_v36  ;;  %v6270_v46 = vld [vmem:[#allocation8 + $0x7d0] sm:$0xff]  }
 0x175   :  { %5693 = vmatprep.subr.bf16.mxu1 %v6235_v50  ;;  %v303_v47 = vcombine.high %v6903_v42, %v6903_v42 }
 0x177   :  { %5674 = vmatpush3.bf16.msra.mxu0 %v6234_v48  ;;  %4155 = vmatmul.mubr.bf16.vlgmr.msra.gmra.mrb[24].mxu1 %v444_v52  ;;  %v6271_v48 = vld [vmem:[#allocation8 + $0x790] sm:$0xff]   ;;  %v451_v50 = vpack.c.bf16 %v303_v47, %v303_v47  ;;  %v6274_v52 = vld [vmem:[#allocation8 + $0x7d8] sm:$0xff]  }
 0x178   :  { %5675 = vmatprep.subr.bf16.mxu0 %v6237_v55  ;;  %5694 = vmatpush3.bf16.msra.mxu1 %v6236_v53  ;;  %v6275_v53 = vld [vmem:[#allocation8 + $0x798] sm:$0xff]   ;;  %v6277_v55 = vld [vmem:[#allocation8 + $0x810] sm:$0xff]  }
 0x179   :  { %5695 = vmatprep.subr.bf16.mxu1 %v6239_v58  ;;  %4234 = vmatprep.mubr.bf16.mxu1 %v449_v45  ;;  %v6280_v58 = vld [vmem:[#allocation8 + $0x858] sm:$0xff]   ;;  %v6309_v47 = vld [vmem:[#allocation8 + $0x950] sm:$0xff]  }
 0x17a   :  { %v6307_v45 = vld [vmem:[#allocation8 + $0x8d8] sm:$0xff]  }
 0x17b   :  { %5676 = vmatpush3.bf16.msra.mxu0 %v6238_v57  ;;  %v6279_v57 = vld [vmem:[#allocation8 + $0x7a0] sm:$0xff]  }
 0x17c   :  { %5677 = vmatprep.subr.bf16.mxu0 %v6241_v61  ;;  %5696 = vmatpush3.bf16.msra.mxu1 %v6240_v60  ;;  %v6282_v60 = vld [vmem:[#allocation8 + $0x7e8] sm:$0xff]  }
 0x17d   :  { %5697 = vmatprep.subr.bf16.mxu1 %v6243_v63  ;;  %v6283_v61 = vld [vmem:[#allocation8 + $0x7a8] sm:$0xff]   ;;  %v6285_v63 = vld [vmem:[#allocation8 + $0x820] sm:$0xff]  }
 0x17f   :  { %5678 = vmatpush3.bf16.msra.mxu0 %v6242_v62  ;;  %v6284_v62 = vld [vmem:[#allocation8 + $0x860] sm:$0xff]  }
 0x180   :  { %5679 = vmatprep.subr.bf16.mxu0 %v6245_v2  ;;  %5698 = vmatpush3.bf16.msra.mxu1 %v6244_v0  ;;  %v6286_v2 = vld [vmem:[#allocation8 + $0x7f0] sm:$0xff]  }
 0x181   :  { %5699 = vmatprep.subr.bf16.mxu1 %v6247_v4  ;;  %v6287_v4 = vld [vmem:[#allocation8 + $0x7b0] sm:$0xff]  }
 0x183   :  { %5680 = vmatpush3.bf16.msra.mxu0 %v6246_v3 }
 0x184   :  { %5681 = vmatprep.subr.bf16.mxu0 %v6249_v6  ;;  %5700 = vmatpush3.bf16.msra.mxu1 %v6248_v5 }
 0x185   :  { %v1332_v10 = vpop.f32.mrb[0].mxu0  ;;  %5701 = vmatprep.subr.bf16.mxu1 %v6251_v8 }
 0x186   :  { %v5948_v12 = vpop.f32.mrb[1].mxu0 }
 0x187   :  { %v1335_v14 = vpop.f32.mrb[2].mxu0  ;;  %5682 = vmatpush3.bf16.msra.mxu0 %v6250_v7  ;;  %v6288_v7 = vld [vmem:[#allocation8 + $0x868] sm:$0xff]   ;;  %v6291_v12 = vld [vmem:[#allocation8 + $0x7b8] sm:$0xff]  }
 0x188   :  { %v5949_v16 = vpop.f32.mrb[3].mxu0  ;;  %5683 = vmatprep.subr.bf16.mxu0 %v6253_v11  ;;  %5702 = vmatpush3.bf16.msra.mxu1 %v6252_v9  ;;  %v6289_v9 = vld [vmem:[#allocation8 + $0x828] sm:$0xff]   ;;  %v6290_v11 = vld [vmem:[#allocation8 + $0x7f8] sm:$0xff]   ;;  %v6292_v14 = vld [vmem:[#allocation8 + $0x870] sm:$0xff]  }
 0x189   :  { %5703 = vmatprep.subr.bf16.mxu1 %v6255_v15  ;;  %v6293_v16 = vld [vmem:[#allocation8 + $0x830] sm:$0xff]  }
 0x18a   :  { %v5401_v21 = vpop.f32.mrb[0].mxu1 }
 0x18b   :  { %5684 = vmatpush3.bf16.msra.mxu0 %v6254_v13  ;;  %v5402_v23 = vpop.f32.mrb[1].mxu1 }
 0x18c   :  { %5685 = vmatprep.subr.bf16.mxu0 %v6257_v19  ;;  %v5403_v25 = vadd.f32 %v5402_v23, %v5401_v21  ;;  %5704 = vmatpush3.bf16.msra.mxu1 %v6256_v17  ;;  %v5404_v27 = vpop.f32.mrb[2].mxu1  ;;  %v6295_v19 = vld [vmem:[#allocation8 + $0x8c0] sm:$0xff]   ;;  %v450_v21 = vpack.c.bf16 %v6903_v42, %v6903_v42  ;;  %v6305_v42 = vld [vmem:[#allocation8 + $0x948] sm:$0xff]  }
 0x18d   :  { %5705 = vmatprep.subr.bf16.mxu1 %v6259_v22  ;;  %v5405_v31 = vpop.f32.mrb[3].mxu1  ;;  %v6296_v22 = vld [vmem:[#allocation8 + $0x878] sm:$0xff]  }
 0x18e   :  { %v6899_v32 = vadd.f32 %v5403_v25, %v1332_v10  ;;  %v6297_v25 = vld [vmem:[#allocation8 + $0x880] sm:$0xff]  }
 0x18f   :  { %5686 = vmatpush3.bf16.msra.mxu0 %v6258_v20  ;;  %v152_v27 = vld [vmem:[#allocation3 + $0x40] sm:$0xff] }
 0x190   :  { %5715 = vmatprep.subr.bf16.mxu0 %v6262_v26  ;;  %5706 = vmatpush3.bf16.msra.mxu1 %v6260_v24  ;;  %v6298_v26 = vld [vmem:[#allocation8 + $0x838] sm:$0xff]   ;;  %v304_v31 = vcombine.high %v152_v27, %v152_v27 }
 0x191   :  { %5707 = vmatprep.subr.bf16.mxu1 %v6263_v29  ;;  %v6299_v29 = vld [vmem:[#allocation8 + $0x8c8] sm:$0xff]  }
 0x192   :  { %4195 = vmatmul.mubr.bf16.vlgmr.msra.gmra.mrb[28].mxu0 %v446_v28  ;;  %v311_v28 = vrot.slane %v152_v27, %v6840_v30  ;;  %v6914_v35 = vrot.slane %v304_v31, %v6840_v30 }
 0x193   :  { %5716 = vmatpush3.bf16.msra.mxu0 %v6264_v33  ;;  %4274 = vmatprep.mubr.bf16.mxu0 %v451_v50  ;;  %v6312_v50 = vld [vmem:[#allocation8 + $0x8a0] sm:$0xff]  }
 0x194   :  { %5717 = vmatprep.subr.bf16.mxu0 %v6266_v37  ;;  %5708 = vmatpush3.bf16.msra.mxu1 %v6265_v34  ;;  %v319_v33 = vcombine.high %v311_v28, %v311_v28  ;;  %v6301_v34 = vld [vmem:[#allocation8 + $0x940] sm:$0xff]   ;;  %v452_v36 = vpack.c.bf16 %v311_v28, %v311_v28  ;;  %v320_v40 = vcombine.high %v6914_v35, %v6914_v35 }
 0x195   :  { %5737 = vmatprep.subr.bf16.mxu1 %v6268_v41  ;;  %v6302_v37 = vld [vmem:[#allocation8 + $0x900] sm:$0xff]   ;;  %v6304_v41 = vld [vmem:[#allocation8 + $0x890] sm:$0xff]  }
 0x196   :  { %v453_v38 = vpack.c.bf16 %v319_v33, %v319_v33 }
 0x197   :  { %5718 = vmatpush3.bf16.msra.mxu0 %v6267_v39  ;;  %4235 = vmatmul.mubr.bf16.vlgmr.msra.gmra.mrb[28].mxu1 %v448_v43  ;;  %v6303_v39 = vld [vmem:[#allocation8 + $0x8d0] sm:$0xff]   ;;  %v455_v43 = vpack.c.bf16 %v320_v40, %v320_v40 }
 0x198   :  { %5719 = vmatprep.subr.bf16.mxu0 %v6270_v46  ;;  %5738 = vmatpush3.bf16.msra.mxu1 %v6269_v44  ;;  %v6306_v44 = vld [vmem:[#allocation8 + $0x908] sm:$0xff]   ;;  %v6308_v46 = vld [vmem:[#allocation8 + $0x898] sm:$0xff]   ;;  %v6342_v40 = vld [vmem:[#allocation8 + $0xa50] sm:$0xff]  }
 0x199   :  { %5739 = vmatprep.subr.bf16.mxu1 %v6272_v49  ;;  %4314 = vmatprep.mubr.bf16.mxu1 %v453_v38  ;;  %v6311_v49 = vld [vmem:[#allocation8 + $0x8e0] sm:$0xff]   ;;  %v6340_v38 = vld [vmem:[#allocation8 + $0x9d8] sm:$0xff]  }
 0x19b   :  { %5720 = vmatpush3.bf16.msra.mxu0 %v6271_v48  ;;  %v6310_v48 = vld [vmem:[#allocation8 + $0x910] sm:$0xff]  }
 0x19c   :  { %5721 = vmatprep.subr.bf16.mxu0 %v6274_v52  ;;  %5740 = vmatpush3.bf16.msra.mxu1 %v6273_v51  ;;  %v6313_v51 = vld [vmem:[#allocation8 + $0x958] sm:$0xff]  }
 0x19d   :  { %5741 = vmatprep.subr.bf16.mxu1 %v6276_v54  ;;  %v6314_v52 = vld [vmem:[#allocation8 + $0x918] sm:$0xff]   ;;  %v6316_v54 = vld [vmem:[#allocation8 + $0x8a8] sm:$0xff]  }
 0x19f   :  { %5722 = vmatpush3.bf16.msra.mxu0 %v6275_v53  ;;  %v6315_v53 = vld [vmem:[#allocation8 + $0x8e8] sm:$0xff]  }
 0x1a0   :  { %5723 = vmatprep.subr.bf16.mxu0 %v6278_v56  ;;  %5742 = vmatpush3.bf16.msra.mxu1 %v6277_v55  ;;  %v6317_v55 = vld [vmem:[#allocation8 + $0x960] sm:$0xff]  }
 0x1a1   :  { %5743 = vmatprep.subr.bf16.mxu1 %v6280_v58  ;;  %v6318_v56 = vld [vmem:[#allocation8 + $0x920] sm:$0xff]   ;;  %v6319_v58 = vld [vmem:[#allocation8 + $0x8f0] sm:$0xff]  }
 0x1a3   :  { %5724 = vmatpush3.bf16.msra.mxu0 %v6279_v57 }
 0x1a4   :  { %5725 = vmatprep.subr.bf16.mxu0 %v6282_v60  ;;  %5744 = vmatpush3.bf16.msra.mxu1 %v6281_v59  ;;  %v6320_v60 = vld [vmem:[#allocation8 + $0x8b0] sm:$0xff]  }
 0x1a5   :  { %v5423_v0 = vpop.f32.mrb[4].mxu0  ;;  %5745 = vmatprep.subr.bf16.mxu1 %v6284_v62 }
 0x1a6   :  { %v5424_v3 = vpop.f32.mrb[5].mxu0 }
 0x1a7   :  { %v5425_v5 = vadd.f32 %v5424_v3, %v5423_v0  ;;  %v5426_v6 = vpop.f32.mrb[6].mxu0  ;;  %5726 = vmatpush3.bf16.msra.mxu0 %v6283_v61 }
 0x1a8   :  { %v5427_v8 = vpop.f32.mrb[7].mxu0  ;;  %5727 = vmatprep.subr.bf16.mxu0 %v6286_v2  ;;  %5746 = vmatpush3.bf16.msra.mxu1 %v6285_v63  ;;  %v6321_v63 = vld [vmem:[#allocation8 + $0x968] sm:$0xff]  }
 0x1a9   :  { %v3717_v10 = vadd.f32 %v5425_v5, %v6899_v32  ;;  %5747 = vmatprep.subr.bf16.mxu1 %v6288_v7  ;;  %v6300_v32 = vld [vmem:[#allocation8 + $0x888] sm:$0xff]   ;;  %v6324_v5 = vld [vmem:[#allocation8 + $0x8b8] sm:$0xff]   ;;  %v6325_v7 = vld [vmem:[#allocation8 + $0x970] sm:$0xff]  }
 0x1aa   :  { %v5445_v13 = vpop.f32.mrb[4].mxu1  ;;  %v6322_v2 = vld [vmem:[#allocation8 + $0x928] sm:$0xff]  }
 0x1ab   :  { %5728 = vmatpush3.bf16.msra.mxu0 %v6287_v4  ;;  %v5446_v15 = vpop.f32.mrb[5].mxu1  ;;  %v6323_v4 = vld [vmem:[#allocation8 + $0x8f8] sm:$0xff]  }
 0x1ac   :  { %5729 = vmatprep.subr.bf16.mxu0 %v6290_v11  ;;  %v5447_v17 = vadd.f32 %v5446_v15, %v5445_v13  ;;  %5748 = vmatpush3.bf16.msra.mxu1 %v6289_v9  ;;  %v5448_v20 = vpop.f32.mrb[6].mxu1  ;;  %v6326_v9 = vld [vmem:[#allocation8 + $0x930] sm:$0xff]   ;;  %v6328_v11 = vld [vmem:[#allocation8 + $0x9c0] sm:$0xff]   ;;  %v454_v13 = vpack.c.bf16 %v6914_v35, %v6914_v35  ;;  %v6338_v35 = vld [vmem:[#allocation8 + $0xa48] sm:$0xff]  }
 0x1ad   :  { %5749 = vmatprep.subr.bf16.mxu1 %v6292_v14  ;;  %v5449_v23 = vpop.f32.mrb[7].mxu1  ;;  %v6329_v14 = vld [vmem:[#allocation8 + $0x978] sm:$0xff]   ;;  %v153_v20 = vld [vmem:[#allocation3 + $0x48] sm:$0xff] }
 0x1ae   :  { %v6910_v24 = vadd.f32 %v5447_v17, %v3717_v10  ;;  %v6330_v17 = vld [vmem:[#allocation8 + $0x980] sm:$0xff]   ;;  %v321_v23 = vcombine.high %v153_v20, %v153_v20 }
 0x1af   :  { %5730 = vmatpush3.bf16.msra.mxu0 %v6291_v12 }
 0x1b0   :  { %5759 = vmatprep.subr.bf16.mxu0 %v6295_v19  ;;  %5750 = vmatpush3.bf16.msra.mxu1 %v6293_v16  ;;  %v6331_v19 = vld [vmem:[#allocation8 + $0x938] sm:$0xff]   ;;  %v6925_v27 = vrot.slane %v321_v23, %v6840_v30 }
 0x1b1   :  { %5751 = vmatprep.subr.bf16.mxu1 %v6296_v22  ;;  %v6332_v22 = vld [vmem:[#allocation8 + $0x9c8] sm:$0xff]  }
 0x1b2   :  { %4275 = vmatmul.mubr.bf16.vlgmr.msra.gmra.mrb[32].mxu0 %v450_v21  ;;  %v328_v21 = vrot.slane %v153_v20, %v6840_v30  ;;  %v337_v33 = vcombine.high %v6925_v27, %v6925_v27 }
 0x1b3   :  { %5760 = vmatpush3.bf16.msra.mxu0 %v6297_v25  ;;  %4354 = vmatprep.mubr.bf16.mxu0 %v455_v43  ;;  %v6345_v43 = vld [vmem:[#allocation8 + $0x9a0] sm:$0xff]  }
 0x1b4   :  { %5761 = vmatprep.subr.bf16.mxu0 %v6299_v29  ;;  %5752 = vmatpush3.bf16.msra.mxu1 %v6298_v26  ;;  %v336_v25 = vcombine.high %v328_v21, %v328_v21  ;;  %v6334_v26 = vld [vmem:[#allocation8 + $0xa40] sm:$0xff]   ;;  %v456_v28 = vpack.c.bf16 %v328_v21, %v328_v21 }
 0x1b5   :  { %5781 = vmatprep.subr.bf16.mxu1 %v6301_v34  ;;  %v6335_v29 = vld [vmem:[#allocation8 + $0xa00] sm:$0xff]   ;;  %v6337_v34 = vld [vmem:[#allocation8 + $0x990] sm:$0xff]  }
 0x1b6   :  { %v457_v31 = vpack.c.bf16 %v336_v25, %v336_v25 }
 0x1b7   :  { %5762 = vmatpush3.bf16.msra.mxu0 %v6300_v32  ;;  %4315 = vmatmul.mubr.bf16.vlgmr.msra.gmra.mrb[32].mxu1 %v452_v36  ;;  %v6336_v32 = vld [vmem:[#allocation8 + $0x9d0] sm:$0xff]   ;;  %v459_v36 = vpack.c.bf16 %v337_v33, %v337_v33 }
 0x1b8   :  { %5763 = vmatprep.subr.bf16.mxu0 %v6303_v39  ;;  %5782 = vmatpush3.bf16.msra.mxu1 %v6302_v37  ;;  %v6339_v37 = vld [vmem:[#allocation8 + $0xa08] sm:$0xff]   ;;  %v6341_v39 = vld [vmem:[#allocation8 + $0x998] sm:$0xff]   ;;  %v6375_v33 = vld [vmem:[#allocation8 + $0xb50] sm:$0xff]  }
 0x1b9   :  { %5783 = vmatprep.subr.bf16.mxu1 %v6305_v42  ;;  %4394 = vmatprep.mubr.bf16.mxu1 %v457_v31  ;;  %v6344_v42 = vld [vmem:[#allocation8 + $0x9e0] sm:$0xff]   ;;  %v6373_v31 = vld [vmem:[#allocation8 + $0xad8] sm:$0xff]  }
 0x1bb   :  { %5764 = vmatpush3.bf16.msra.mxu0 %v6304_v41  ;;  %v6343_v41 = vld [vmem:[#allocation8 + $0xa10] sm:$0xff]  }
 0x1bc   :  { %5765 = vmatprep.subr.bf16.mxu0 %v6307_v45  ;;  %5784 = vmatpush3.bf16.msra.mxu1 %v6306_v44  ;;  %v6346_v44 = vld [vmem:[#allocation8 + $0xa58] sm:$0xff]  }
 0x1bd   :  { %5785 = vmatprep.subr.bf16.mxu1 %v6309_v47  ;;  %v6347_v45 = vld [vmem:[#allocation8 + $0xa18] sm:$0xff]   ;;  %v6349_v47 = vld [vmem:[#allocation8 + $0x9a8] sm:$0xff]  }
 0x1bf   :  { %5766 = vmatpush3.bf16.msra.mxu0 %v6308_v46  ;;  %v6348_v46 = vld [vmem:[#allocation8 + $0x9e8] sm:$0xff]  }
 0x1c0   :  { %5767 = vmatprep.subr.bf16.mxu0 %v6311_v49  ;;  %5786 = vmatpush3.bf16.msra.mxu1 %v6310_v48  ;;  %v6350_v48 = vld [vmem:[#allocation8 + $0xa60] sm:$0xff]  }
 0x1c1   :  { %5787 = vmatprep.subr.bf16.mxu1 %v6313_v51 }
 0x1c3   :  { %5768 = vmatpush3.bf16.msra.mxu0 %v6312_v50  ;;  %v6351_v50 = vld [vmem:[#allocation8 + $0xa20] sm:$0xff]  }
 0x1c4   :  { %5769 = vmatprep.subr.bf16.mxu0 %v6315_v53  ;;  %5788 = vmatpush3.bf16.msra.mxu1 %v6314_v52  ;;  %v6352_v52 = vld [vmem:[#allocation8 + $0x9f0] sm:$0xff]  }
 0x1c5   :  { %v5467_v57 = vpop.f32.mrb[8].mxu0  ;;  %5789 = vmatprep.subr.bf16.mxu1 %v6317_v55  ;;  %v6353_v55 = vld [vmem:[#allocation8 + $0x9b0] sm:$0xff]  }
 0x1c6   :  { %v5468_v59 = vpop.f32.mrb[9].mxu0 }
 0x1c7   :  { %v5469_v61 = vadd.f32 %v5468_v59, %v5467_v57  ;;  %v5470_v62 = vpop.f32.mrb[10].mxu0  ;;  %5770 = vmatpush3.bf16.msra.mxu0 %v6316_v54  ;;  %v6354_v57 = vld [vmem:[#allocation8 + $0xa68] sm:$0xff]  }
 0x1c8   :  { %v5471_v0 = vpop.f32.mrb[11].mxu0  ;;  %5771 = vmatprep.subr.bf16.mxu0 %v6319_v58  ;;  %5790 = vmatpush3.bf16.msra.mxu1 %v6318_v56  ;;  %v6355_v59 = vld [vmem:[#allocation8 + $0xa28] sm:$0xff]   ;;  %v6357_v62 = vld [vmem:[#allocation8 + $0x9b8] sm:$0xff]  }
 0x1c9   :  { %v3797_v3 = vadd.f32 %v5469_v61, %v6910_v24  ;;  %5791 = vmatprep.subr.bf16.mxu1 %v6321_v63  ;;  %v6333_v24 = vld [vmem:[#allocation8 + $0x988] sm:$0xff]   ;;  %v6358_v0 = vld [vmem:[#allocation8 + $0xa70] sm:$0xff]  }
 0x1ca   :  { %v5489_v6 = vpop.f32.mrb[8].mxu1 }
 0x1cb   :  { %5772 = vmatpush3.bf16.msra.mxu0 %v6320_v60  ;;  %v5490_v8 = vpop.f32.mrb[9].mxu1  ;;  %v6356_v60 = vld [vmem:[#allocation8 + $0x9f8] sm:$0xff]  }
 0x1cc   :  { %5773 = vmatprep.subr.bf16.mxu0 %v6323_v4  ;;  %v5491_v10 = vadd.f32 %v5490_v8, %v5489_v6  ;;  %5792 = vmatpush3.bf16.msra.mxu1 %v6322_v2  ;;  %v5492_v12 = vpop.f32.mrb[10].mxu1  ;;  %v6361_v6 = vld [vmem:[#allocation8 + $0xac0] sm:$0xff]  }
 0x1cd   :  { %5793 = vmatprep.subr.bf16.mxu1 %v6325_v7  ;;  %v5493_v15 = vpop.f32.mrb[11].mxu1  ;;  %v154_v12 = vld [vmem:[#allocation3 + $0x50] sm:$0xff] }
 0x1ce   :  { %v6921_v16 = vadd.f32 %v5491_v10, %v3797_v3  ;;  %v6359_v3 = vld [vmem:[#allocation8 + $0xa30] sm:$0xff]   ;;  %v6363_v10 = vld [vmem:[#allocation8 + $0xa80] sm:$0xff]   ;;  %v338_v15 = vcombine.high %v154_v12, %v154_v12 }
 0x1cf   :  { %5774 = vmatpush3.bf16.msra.mxu0 %v6324_v5  ;;  %v458_v5 = vpack.c.bf16 %v6925_v27, %v6925_v27  ;;  %v6371_v27 = vld [vmem:[#allocation8 + $0xb48] sm:$0xff]  }
 0x1d0   :  { %5803 = vmatprep.subr.bf16.mxu0 %v6328_v11  ;;  %5794 = vmatpush3.bf16.msra.mxu1 %v6326_v9  ;;  %v6362_v9 = vld [vmem:[#allocation8 + $0xa78] sm:$0xff]   ;;  %v6936_v20 = vrot.slane %v338_v15, %v6840_v30 }
 0x1d1   :  { %5795 = vmatprep.subr.bf16.mxu1 %v6329_v14  ;;  %v6364_v11 = vld [vmem:[#allocation8 + $0xa38] sm:$0xff]   ;;  %v6365_v14 = vld [vmem:[#allocation8 + $0xac8] sm:$0xff]  }
 0x1d2   :  { %4355 = vmatmul.mubr.bf16.vlgmr.msra.gmra.mrb[36].mxu0 %v454_v13  ;;  %v345_v13 = vrot.slane %v154_v12, %v6840_v30  ;;  %v354_v25 = vcombine.high %v6936_v20, %v6936_v20 }
 0x1d3   :  { %5804 = vmatpush3.bf16.msra.mxu0 %v6330_v17  ;;  %4434 = vmatprep.mubr.bf16.mxu0 %v459_v36  ;;  %v6378_v36 = vld [vmem:[#allocation8 + $0xaa0] sm:$0xff]  }
 0x1d4   :  { %5805 = vmatprep.subr.bf16.mxu0 %v6332_v22  ;;  %5796 = vmatpush3.bf16.msra.mxu1 %v6331_v19  ;;  %v353_v17 = vcombine.high %v345_v13, %v345_v13  ;;  %v6367_v19 = vld [vmem:[#allocation8 + $0xb40] sm:$0xff]   ;;  %v460_v21 = vpack.c.bf16 %v345_v13, %v345_v13 }
 0x1d5   :  { %5825 = vmatprep.subr.bf16.mxu1 %v6334_v26  ;;  %v6368_v22 = vld [vmem:[#allocation8 + $0xb00] sm:$0xff]   ;;  %v6370_v26 = vld [vmem:[#allocation8 + $0xa90] sm:$0xff]  }
 0x1d6   :  { %v461_v23 = vpack.c.bf16 %v353_v17, %v353_v17  ;;  %v6402_v17 = vld [vmem:[#allocation8 + $0xbd8] sm:$0xff]  }
 0x1d7   :  { %5806 = vmatpush3.bf16.msra.mxu0 %v6333_v24  ;;  %4395 = vmatmul.mubr.bf16.vlgmr.msra.gmra.mrb[36].mxu1 %v456_v28  ;;  %v6369_v24 = vld [vmem:[#allocation8 + $0xad0] sm:$0xff]   ;;  %v463_v28 = vpack.c.bf16 %v354_v25, %v354_v25 }
 0x1d8   :  { %5807 = vmatprep.subr.bf16.mxu0 %v6336_v32  ;;  %5826 = vmatpush3.bf16.msra.mxu1 %v6335_v29  ;;  %v6372_v29 = vld [vmem:[#allocation8 + $0xb08] sm:$0xff]   ;;  %v6374_v32 = vld [vmem:[#allocation8 + $0xa98] sm:$0xff]  }
 0x1d9   :  { %5827 = vmatprep.subr.bf16.mxu1 %v6338_v35  ;;  %4474 = vmatprep.mubr.bf16.mxu1 %v461_v23  ;;  %v6377_v35 = vld [vmem:[#allocation8 + $0xae0] sm:$0xff]   ;;  %v6407_v23 = vld [vmem:[#allocation8 + $0xba8] sm:$0xff]  }
 0x1db   :  { %5808 = vmatpush3.bf16.msra.mxu0 %v6337_v34  ;;  %v6376_v34 = vld [vmem:[#allocation8 + $0xb10] sm:$0xff]  }
 0x1dc   :  { %5809 = vmatprep.subr.bf16.mxu0 %v6340_v38  ;;  %5828 = vmatpush3.bf16.msra.mxu1 %v6339_v37  ;;  %v6379_v37 = vld [vmem:[#allocation8 + $0xb58] sm:$0xff]  }
 0x1dd   :  { %5829 = vmatprep.subr.bf16.mxu1 %v6342_v40  ;;  %v6380_v38 = vld [vmem:[#allocation8 + $0xb18] sm:$0xff]   ;;  %v6382_v40 = vld [vmem:[#allocation8 + $0xaa8] sm:$0xff]  }
 0x1df   :  { %5810 = vmatpush3.bf16.msra.mxu0 %v6341_v39  ;;  %v6381_v39 = vld [vmem:[#allocation8 + $0xae8] sm:$0xff]  }
 0x1e0   :  { %5811 = vmatprep.subr.bf16.mxu0 %v6344_v42  ;;  %5830 = vmatpush3.bf16.msra.mxu1 %v6343_v41  ;;  %v6383_v41 = vld [vmem:[#allocation8 + $0xb60] sm:$0xff]  }
 0x1e1   :  { %5831 = vmatprep.subr.bf16.mxu1 %v6346_v44 }
 0x1e3   :  { %5812 = vmatpush3.bf16.msra.mxu0 %v6345_v43  ;;  %v6384_v43 = vld [vmem:[#allocation8 + $0xb20] sm:$0xff]  }
 0x1e4   :  { %5813 = vmatprep.subr.bf16.mxu0 %v6348_v46  ;;  %5832 = vmatpush3.bf16.msra.mxu1 %v6347_v45  ;;  %v6385_v45 = vld [vmem:[#allocation8 + $0xaf0] sm:$0xff]  }
 0x1e5   :  { %v5511_v49 = vpop.f32.mrb[12].mxu0  ;;  %5833 = vmatprep.subr.bf16.mxu1 %v6350_v48  ;;  %v6386_v48 = vld [vmem:[#allocation8 + $0xab0] sm:$0xff]  }
 0x1e6   :  { %v5512_v51 = vpop.f32.mrb[13].mxu0 }
 0x1e7   :  { %v5513_v53 = vadd.f32 %v5512_v51, %v5511_v49  ;;  %v5514_v54 = vpop.f32.mrb[14].mxu0  ;;  %5814 = vmatpush3.bf16.msra.mxu0 %v6349_v47 }
 0x1e8   :  { %v5515_v56 = vpop.f32.mrb[15].mxu0  ;;  %5815 = vmatprep.subr.bf16.mxu0 %v6352_v52  ;;  %5834 = vmatpush3.bf16.msra.mxu1 %v6351_v50  ;;  %v6387_v50 = vld [vmem:[#allocation8 + $0xb68] sm:$0xff]  }
 0x1e9   :  { %v3877_v58 = vadd.f32 %v5513_v53, %v6921_v16  ;;  %5835 = vmatprep.subr.bf16.mxu1 %v6354_v57  ;;  %v6366_v16 = vld [vmem:[#allocation8 + $0xa88] sm:$0xff]   ;;  %v6389_v53 = vld [vmem:[#allocation8 + $0xaf8] sm:$0xff]   ;;  %v6391_v57 = vld [vmem:[#allocation8 + $0xb70] sm:$0xff]  }
 0x1ea   :  { %v5533_v61 = vpop.f32.mrb[12].mxu1  ;;  %v6388_v52 = vld [vmem:[#allocation8 + $0xb28] sm:$0xff]  }
 0x1eb   :  { %5816 = vmatpush3.bf16.msra.mxu0 %v6353_v55  ;;  %v5534_v63 = vpop.f32.mrb[13].mxu1  ;;  %v6390_v55 = vld [vmem:[#allocation8 + $0xab8] sm:$0xff]  }
 0x1ec   :  { %5817 = vmatprep.subr.bf16.mxu0 %v6356_v60  ;;  %v5535_v2 = vadd.f32 %v5534_v63, %v5533_v61  ;;  %v5536_v4 = vpop.f32.mrb[14].mxu1  ;;  %5836 = vmatpush3.bf16.msra.mxu1 %v6355_v59  ;;  %v6392_v59 = vld [vmem:[#allocation8 + $0xb30] sm:$0xff]   ;;  %v462_v61 = vpack.c.bf16 %v6936_v20, %v6936_v20  ;;  %v6403_v20 = vld [vmem:[#allocation8 + $0xb98] sm:$0xff]  }
 0x1ed   :  { %v5537_v7 = vpop.f32.mrb[15].mxu1  ;;  %5837 = vmatprep.subr.bf16.mxu1 %v6358_v0  ;;  %v6397_v4 = vld [vmem:[#allocation8 + $0xb38] sm:$0xff]  }
 0x1ee   :  { %v6932_v8 = vadd.f32 %v5535_v2, %v3877_v58  ;;  %v6395_v2 = vld [vmem:[#allocation8 + $0xb78] sm:$0xff]   ;;  %v6398_v7 = vld [vmem:[#allocation8 + $0xbc8] sm:$0xff]  }
 0x1ef   :  { %5818 = vmatpush3.bf16.msra.mxu0 %v6357_v62  ;;  %v6394_v62 = vld [vmem:[#allocation8 + $0xbc0] sm:$0xff]  }
 0x1f0   :  { %5847 = vmatprep.subr.bf16.mxu0 %v6361_v6  ;;  %5838 = vmatpush3.bf16.msra.mxu1 %v6359_v3  ;;  %v6396_v3 = vld [vmem:[#allocation8 + $0xb80] sm:$0xff]  }
 0x1f1   :  { %5839 = vmatprep.subr.bf16.mxu1 %v6362_v9  ;;  %v6399_v9 = vld [vmem:[#allocation8 + $0xb88] sm:$0xff]  }
 0x1f2   :  { %4435 = vmatmul.mubr.bf16.vlgmr.msra.gmra.mrb[40].mxu0 %v458_v5  ;;  %v155_v5 = vld [vmem:[#allocation3 + $0x58] sm:$0xff] }
 0x1f3   :  { %5848 = vmatpush3.bf16.msra.mxu0 %v6363_v10  ;;  %4514 = vmatprep.mubr.bf16.mxu0 %v463_v28  ;;  %v362_v6 = vrot.slane %v155_v5, %v6840_v30 }
 0x1f4   :  { %5849 = vmatprep.subr.bf16.mxu0 %v6365_v14  ;;  %5840 = vmatpush3.bf16.msra.mxu1 %v6364_v11  ;;  %v6400_v11 = vld [vmem:[#allocation8 + $0xbd0] sm:$0xff]  }
 0x1f5   :  { %5869 = vmatprep.subr.bf16.mxu1 %v6367_v19  ;;  %v370_v10 = vcombine.high %v362_v6, %v362_v6  ;;  %v464_v13 = vpack.c.bf16 %v362_v6, %v362_v6  ;;  %v6416_v6 = vld [vmem:[%s7034_s6 + $0x18] sm:$0xff]  }
 0x1f7   :  { %5850 = vmatpush3.bf16.msra.mxu0 %v6366_v16  ;;  %4475 = vmatmul.mubr.bf16.vlgmr.msra.gmra.mrb[40].mxu1 %v460_v21  ;;  %v465_v14 = vpack.c.bf16 %v370_v10, %v370_v10  ;;  %v6401_v16 = vld [vmem:[#allocation8 + $0xb90] sm:$0xff]   ;;  %v6405_v21 = vld [vmem:[#allocation8 + $0xba0] sm:$0xff]  }
 0x1f8   :  { %5851 = vmatprep.subr.bf16.mxu0 %v6369_v24  ;;  %5870 = vmatpush3.bf16.msra.mxu1 %v6368_v22  ;;  %v6406_v22 = vld [vmem:[#allocation8 + $0xbe8] sm:$0xff]   ;;  %v6408_v24 = vld [vmem:[#allocation8 + $0xbf0] sm:$0xff]  }
 0x1f9   :  { %5871 = vmatprep.subr.bf16.mxu1 %v6371_v27  ;;  %4554 = vmatprep.mubr.bf16.mxu1 %v465_v14  ;;  %v6419_v14 = vld [vmem:[%s7034_s6 + $0x30] sm:$0xff]  }
 0x1fb   :  { %5852 = vmatpush3.bf16.msra.mxu0 %v6370_v26 }
 0x1fc   :  { %5853 = vmatprep.subr.bf16.mxu0 %v6373_v31  ;;  %5872 = vmatpush3.bf16.msra.mxu1 %v6372_v29  ;;  %v6409_v29 = vld [vmem:[#allocation8 + $0xbb0] sm:$0xff]  }
 0x1fd   :  { %5873 = vmatprep.subr.bf16.mxu1 %v6375_v33 }
 0x1ff   :  { %5854 = vmatpush3.bf16.msra.mxu0 %v6374_v32  ;;  %v6410_v32 = vld [vmem:[#allocation8 + $0xbf8] sm:$0xff]  }
 0x200   :  { %5855 = vmatprep.subr.bf16.mxu0 %v6377_v35  ;;  %5874 = vmatpush3.bf16.msra.mxu1 %v6376_v34  ;;  %v6411_v35 = vld [vmem:[#allocation8 + $0xbb8] sm:$0xff]  }
 0x201   :  { %5875 = vmatprep.subr.bf16.mxu1 %v6379_v37 }
 0x203   :  { %5856 = vmatpush3.bf16.msra.mxu0 %v6378_v36 }
 0x204   :  { %5857 = vmatprep.subr.bf16.mxu0 %v6381_v39  ;;  %5876 = vmatpush3.bf16.msra.mxu1 %v6380_v38 }
 0x205   :  { %v5555_v42 = vpop.f32.mrb[16].mxu0  ;;  %5877 = vmatprep.subr.bf16.mxu1 %v6383_v41 }
 0x206   :  { %v5556_v44 = vpop.f32.mrb[17].mxu0 }
 0x207   :  { %v5557_v46 = vadd.f32 %v5556_v44, %v5555_v42  ;;  %v5558_v47 = vpop.f32.mrb[18].mxu0  ;;  %5858 = vmatpush3.bf16.msra.mxu0 %v6382_v40 }
 0x208   :  { %v5559_v49 = vpop.f32.mrb[19].mxu0  ;;  %5859 = vmatprep.subr.bf16.mxu0 %v6385_v45  ;;  %5878 = vmatpush3.bf16.msra.mxu1 %v6384_v43 }
 0x209   :  { %v3957_v51 = vadd.f32 %v5557_v46, %v6932_v8  ;;  %5879 = vmatprep.subr.bf16.mxu1 %v6387_v50  ;;  %v355_v8 = vcombine.high %v155_v5, %v155_v5  ;;  %v6415_v5 = vld [vmem:[%s7034_s6 + $0x10] sm:$0xff]  }
 0x20a   :  { %v5577_v54 = vpop.f32.mrb[16].mxu1 }
 0x20b   :  { %5860 = vmatpush3.bf16.msra.mxu0 %v6386_v48  ;;  %v5578_v56 = vpop.f32.mrb[17].mxu1  ;;  %v369_v12 = vrot.slane %v355_v8, %v6840_v30  ;;  %v6404_v30 = vld [vmem:[#allocation8 + $0xbe0] sm:$0xff]  }
 0x20c   :  { %5861 = vmatprep.subr.bf16.mxu0 %v6389_v53  ;;  %v5579_v58 = vadd.f32 %v5578_v56, %v5577_v54  ;;  %v5580_v60 = vpop.f32.mrb[18].mxu1  ;;  %5880 = vmatpush3.bf16.msra.mxu1 %v6388_v52  ;;  %v6418_v8 = vld [vmem:[%s7034_s6 + $0x28] sm:$0xff]  }
 0x20d   :  { %v5581_v63 = vpop.f32.mrb[19].mxu1  ;;  %5881 = vmatprep.subr.bf16.mxu1 %v6391_v57  ;;  %v371_v15 = vcombine.high %v369_v12, %v369_v12  ;;  %v466_v39 = vpack.c.bf16 %v369_v12, %v369_v12 }
 0x20e   :  { %v3997_v0 = vadd.f32 %v5579_v58, %v3957_v51 }
 0x20f   :  { %5862 = vmatpush3.bf16.msra.mxu0 %v6390_v55  ;;  %v467_v19 = vpack.c.bf16 %v371_v15, %v371_v15 }
 0x210   :  { %5891 = vmatprep.subr.bf16.mxu0 %v6394_v62  ;;  %5882 = vmatpush3.bf16.msra.mxu1 %v6392_v59 }
 0x211   :  { %5883 = vmatprep.subr.bf16.mxu1 %v6395_v2 }
 0x212   :  { %4515 = vmatmul.mubr.bf16.vlgmr.msra.gmra.mrb[44].mxu0 %v462_v61 }
 0x213   :  { %5892 = vmatpush3.bf16.msra.mxu0 %v6396_v3  ;;  %4594 = vmatprep.mubr.bf16.mxu0 %v467_v19  ;;  %v6413_v3 = vld [vmem:[%s7034_s6] sm:$0xff]   ;;  %v6420_v19 = vld [vmem:[%s7034_s6 + $0x38] sm:$0xff]  }
 0x214   :  { %5893 = vmatprep.subr.bf16.mxu0 %v6398_v7  ;;  %5884 = vmatpush3.bf16.msra.mxu1 %v6397_v4  ;;  %v6414_v4 = vld [vmem:[%s7034_s6 + $0x8] sm:$0xff]   ;;  %v6417_v7 = vld [vmem:[%s7034_s6 + $0x20] sm:$0xff]  }
 0x215   :  { %5950 = vmatprep.subr.bf16.mxu1 %v6653_v1 }
 0x217   :  { %5894 = vmatpush3.bf16.msra.mxu0 %v6399_v9  ;;  %4555 = vmatmul.mubr.bf16.vlgmr.msra.gmra.mrb[44].mxu1 %v464_v13 }
 0x218   :  { %5895 = vmatprep.subr.bf16.mxu0 %v6400_v11  ;;  %5966 = vmatprep.mubr.msk.bf16.mxu1 %vm6654_vm0, %v6653_v1 }
 0x219   :  { %5951 = vmatpush3.bf16.msra.mxu1 %v6413_v3  ;;  %v5354_v3 = vld [vmem:[#allocation11] ss:$0 sm:$0xff] }
 0x21a   :  { %5952 = vmatprep.subr.bf16.mxu1 %v6653_v1 }
 0x21b   :  { %5896 = vmatpush3.bf16.msra.mxu0 %v6401_v16 }
 0x21c   :  { %5897 = vmatprep.subr.bf16.mxu0 %v6402_v17 }
 0x21d   :  { %5953 = vmatpush3.bf16.msra.mxu1 %v6414_v4 }
 0x21e   :  { %5954 = vmatprep.subr.bf16.mxu1 %v6653_v1 }
 0x21f   :  { %5898 = vmatpush3.bf16.msra.mxu0 %v6403_v20 }
 0x220   :  { %5899 = vmatprep.subr.bf16.mxu0 %v6404_v30 }
 0x221   :  { %5955 = vmatpush3.bf16.msra.mxu1 %v6415_v5 }
 0x222   :  { %5956 = vmatprep.subr.bf16.mxu1 %v6653_v1 }
 0x223   :  { %5900 = vmatpush3.bf16.msra.mxu0 %v6405_v21 }
 0x224   :  { %5901 = vmatprep.subr.bf16.mxu0 %v6406_v22 }
 0x225   :  { %v5599_v25 = vpop.f32.mrb[20].mxu0  ;;  %5957 = vmatpush3.bf16.msra.mxu1 %v6416_v6 }
 0x226   :  { %v5600_v26 = vpop.f32.mrb[21].mxu0  ;;  %5958 = vmatprep.subr.bf16.mxu1 %v6653_v1 }
 0x227   :  { %v5601_v27 = vadd.f32 %v5600_v26, %v5599_v25  ;;  %v5602_v28 = vpop.f32.mrb[22].mxu0  ;;  %5902 = vmatpush3.bf16.msra.mxu0 %v6407_v23  ;;  %v6421_v23 = vld [vmem:[#allocation14] sm:$0xff]  }
 0x228   :  { %v5603_v31 = vpop.f32.mrb[23].mxu0  ;;  %5903 = vmatprep.subr.bf16.mxu0 %v6408_v24  ;;  %v6422_v24 = vld [vmem:[#allocation14 + $0x8] sm:$0xff]  }
 0x229   :  { %v4037_v33 = vadd.f32 %v5601_v27, %v3997_v0  ;;  %5959 = vmatpush3.bf16.msra.mxu1 %v6417_v7 }
 0x22a   :  { %v5621_v34 = vpop.f32.mrb[20].mxu1  ;;  %5960 = vmatprep.subr.bf16.mxu1 %v6653_v1 }
 0x22b   :  { %5904 = vmatpush3.bf16.msra.mxu0 %v6409_v29  ;;  %v5622_v36 = vpop.f32.mrb[21].mxu1 }
 0x22c   :  { %5905 = vmatprep.subr.bf16.mxu0 %v6410_v32  ;;  %v5623_v37 = vadd.f32 %v5622_v36, %v5621_v34  ;;  %v5624_v38 = vpop.f32.mrb[22].mxu1 }
 0x22d   :  { %v5625_v40 = vpop.f32.mrb[23].mxu1  ;;  %5961 = vmatpush3.bf16.msra.mxu1 %v6418_v8  ;;  %v6423_v8 = vld [vmem:[#allocation14 + $0x10] sm:$0xff]  }
 0x22e   :  { %v4077_v41 = vadd.f32 %v5623_v37, %v4037_v33  ;;  %5962 = vmatprep.subr.bf16.mxu1 %v6653_v1 }
 0x22f   :  { %5906 = vmatpush3.bf16.msra.mxu0 %v6411_v35 }
 0x230   :  { %5970 = vmatprep.subr.bf16.mxu0 %v6653_v1 }
 0x231   :  { %5963 = vmatpush3.bf16.msra.mxu1 %v6419_v14 }
 0x232   :  { %4595 = vmatmul.mubr.bf16.vlgmr.msra.gmra.mrb[48].mxu0 %v466_v39  ;;  %5964 = vmatprep.subr.bf16.mxu1 %v6653_v1 }
 0x233   :  { %5978 = vmatprep.mubr.msk.bf16.mxu0 %vm6654_vm0, %v6653_v1  ;;  %5971 = vmatpush3.bf16.msra.mxu0 %v6421_v23 }
 0x234   :  { %5972 = vmatprep.subr.bf16.mxu0 %v6653_v1 }
 0x235   :  { %5965 = vmatpush3.bf16.msra.mxu1 %v6420_v19 }
 0x236   :  { %5982 = vmatprep.subr.bf16.mxu1 %v6653_v1 }
 0x237   :  { %5973 = vmatpush3.bf16.msra.mxu0 %v6422_v24 }
 0x238   :  { %5974 = vmatprep.subr.bf16.mxu0 %v6653_v1 }
 0x23b   :  { %5975 = vmatpush3.bf16.msra.mxu0 %v6423_v8 }
 0x23c   :  { %5976 = vmatprep.subr.bf16.mxu0 %v6653_v1 }
 0x245   :  { %v5643_v42 = vpop.f32.mrb[24].mxu0 }
 0x246   :  { %v5644_v43 = vpop.f32.mrb[25].mxu0 }
 0x247   :  { %v5645_v44 = vadd.f32 %v5644_v43, %v5643_v42  ;;  %v5646_v45 = vpop.f32.mrb[26].mxu0 }
 0x248   :  { %v5647_v46 = vpop.f32.mrb[27].mxu0 }
 0x249   :  { %v4117_v47 = vadd.f32 %v5645_v44, %v4077_v41 }
 0x24a   :  { %v5665_v48 = vpop.f32.mrb[24].mxu1 }
 0x24b   :  { %v5666_v49 = vpop.f32.mrb[25].mxu1 }
 0x24c   :  { %v5667_v50 = vadd.f32 %v5666_v49, %v5665_v48  ;;  %v5668_v51 = vpop.f32.mrb[26].mxu1 }
 0x24d   :  { %v5669_v52 = vpop.f32.mrb[27].mxu1 }
 0x24e   :  { %v4157_v53 = vadd.f32 %v5667_v50, %v4117_v47 }
 0x265   :  { %v5687_v54 = vpop.f32.mrb[28].mxu0 }
 0x266   :  { %v5688_v55 = vpop.f32.mrb[29].mxu0 }
 0x267   :  { %v5689_v56 = vadd.f32 %v5688_v55, %v5687_v54  ;;  %v5690_v57 = vpop.f32.mrb[30].mxu0 }
 0x268   :  { %v5691_v58 = vpop.f32.mrb[31].mxu0 }
 0x269   :  { %v4197_v59 = vadd.f32 %v5689_v56, %v4157_v53 }
 0x26a   :  { %v5709_v60 = vpop.f32.mrb[28].mxu1 }
 0x26b   :  { %v5710_v61 = vpop.f32.mrb[29].mxu1 }
 0x26c   :  { %v5711_v62 = vadd.f32 %v5710_v61, %v5709_v60  ;;  %v5712_v63 = vpop.f32.mrb[30].mxu1 }
 0x26d   :  { %v5713_v0 = vpop.f32.mrb[31].mxu1 }
 0x26e   :  { %v4237_v2 = vadd.f32 %v5711_v62, %v4197_v59 }
 0x285   :  { %v5731_v9 = vpop.f32.mrb[32].mxu0 }
 0x286   :  { %v5732_v10 = vpop.f32.mrb[33].mxu0 }
 0x287   :  { %v5733_v11 = vadd.f32 %v5732_v10, %v5731_v9  ;;  %v5734_v12 = vpop.f32.mrb[34].mxu0  ;;  %v6424_v9 = vld [vmem:[#allocation14 + $0x18] sm:$0xff]   ;;  %v6425_v10 = vld [vmem:[%s7038_s10] sm:$0xff]  }
 0x288   :  { %v5735_v13 = vpop.f32.mrb[35].mxu0  ;;  %5977 = vmatpush3.bf16.msra.mxu0 %v6424_v9  ;;  %v5355_v12 = vld [vmem:[#allocation12] ss:$0 sm:$0xff] }
 0x289   :  { %v4277_v15 = vadd.f32 %v5733_v11, %v4237_v2  ;;  %v6426_v11 = vld [vmem:[%s7038_s10 + $0x8] sm:$0xff]  }
 0x28a   :  { %v5753_v16 = vpop.f32.mrb[32].mxu1 }
 0x28b   :  { %v5754_v17 = vpop.f32.mrb[33].mxu1 }
 0x28c   :  { %v5755_v20 = vadd.f32 %v5754_v17, %v5753_v16  ;;  %v5756_v30 = vpop.f32.mrb[34].mxu1 }
 0x28d   :  { %v5757_v21 = vpop.f32.mrb[35].mxu1  ;;  %v6427_v30 = vld [vmem:[%s7038_s10 + $0x10] sm:$0xff]  }
 0x28e   :  { %v4317_v22 = vadd.f32 %v5755_v20, %v4277_v15  ;;  %v6428_v21 = vld [vmem:[%s7038_s10 + $0x18] sm:$0xff]  }
 0x2a5   :  { %v5775_v25 = vpop.f32.mrb[36].mxu0 }
 0x2a6   :  { %v5776_v26 = vpop.f32.mrb[37].mxu0 }
 0x2a7   :  { %v5777_v27 = vadd.f32 %v5776_v26, %v5775_v25  ;;  %v5778_v28 = vpop.f32.mrb[38].mxu0 }
 0x2a8   :  { %v5779_v29 = vpop.f32.mrb[39].mxu0 }
 0x2a9   :  { %v4357_v31 = vadd.f32 %v5777_v27, %v4317_v22  ;;  %v5364_v22 = vld [vmem:[#allocation15] ss:$0 sm:$0xff] }
 0x2aa   :  { %v5797_v32 = vpop.f32.mrb[36].mxu1 }
 0x2ab   :  { %v5798_v33 = vpop.f32.mrb[37].mxu1 }
 0x2ac   :  { %v5799_v34 = vadd.f32 %v5798_v33, %v5797_v32  ;;  %v5800_v35 = vpop.f32.mrb[38].mxu1  ;;  %v5370_v32 = vld [vmem:[#allocation2] ss:$0 sm:$0xff] }
 0x2ad   :  { %v5801_v36 = vpop.f32.mrb[39].mxu1 }
 0x2ae   :  { %v4397_v37 = vadd.f32 %v5799_v34, %v4357_v31  ;;  %v6656_v31 = vmov 0  }
 0x2af   :  { %6009 = vset.pattern.permute.xlu0 %v6656_v31 }
 0x2c5   :  { %v5819_v38 = vpop.f32.mrb[40].mxu0 }
 0x2c6   :  { %v5820_v39 = vpop.f32.mrb[41].mxu0 }
 0x2c7   :  { %v5821_v40 = vadd.f32 %v5820_v39, %v5819_v38  ;;  %v5822_v41 = vpop.f32.mrb[42].mxu0 }
 0x2c8   :  { %v5823_v42 = vpop.f32.mrb[43].mxu0 }
 0x2c9   :  { %v4437_v43 = vadd.f32 %v5821_v40, %v4397_v37 }
 0x2ca   :  { %v5841_v44 = vpop.f32.mrb[40].mxu1 }
 0x2cb   :  { %v5842_v45 = vpop.f32.mrb[41].mxu1 }
 0x2cc   :  { %v5843_v46 = vadd.f32 %v5842_v45, %v5841_v44  ;;  %v5844_v47 = vpop.f32.mrb[42].mxu1  ;;  %v4891_v45 = vld [vmem:[%s7030_s2] sm:$0x3]  ;;  %s6657_s2 = smov [#allocation17]  }
 0x2cd   :  { %v5845_v48 = vpop.f32.mrb[43].mxu1  ;;  %s4949_s28 = sshll.u32 %s6657_s2, 4  ;;  %s4950_s28 = int_to_ptr.vmem [resolvable:$true] %s4949_s28 }
 0x2ce   :  { %v4477_v49 = vadd.f32 %v5843_v46, %v4437_v43  ;;  %s6609_s11 = scalar_lea.vmem %s4950_s28, 64  ;;  %p6614_p9 = scmp.lt.s32.totalorder %s4950_s28, %s4950_s28 }
 0x2cf   :  { %p6610_p8 = scmp.ne.s32.totalorder %s4950_s28, %s6609_s11  ;;  %p6615_p10 = scmp.lt.s32.totalorder %s6609_s11, %s6609_s11 }
 0x2d1   :  { %p6616_p11 = por %p6615_p10, %p6614_p9 }
 0x2d3   :  { %p6617_p12 = pnand %p6616_p11, %p6610_p8 }
 0x2e5   :  { %v5863_v50 = vpop.f32.mrb[44].mxu0 }
 0x2e6   :  { %v5864_v51 = vpop.f32.mrb[45].mxu0 }
 0x2e7   :  { %v5865_v52 = vadd.f32 %v5864_v51, %v5863_v50  ;;  %v5866_v53 = vpop.f32.mrb[46].mxu0 }
 0x2e8   :  { %v5867_v54 = vpop.f32.mrb[47].mxu0 }
 0x2e9   :  { %v4517_v55 = vadd.f32 %v5865_v52, %v4477_v49 }
 0x2ea   :  { %v5885_v56 = vpop.f32.mrb[44].mxu1 }
 0x2eb   :  { %v5886_v57 = vpop.f32.mrb[45].mxu1 }
 0x2ec   :  { %v5887_v58 = vadd.f32 %v5886_v57, %v5885_v56  ;;  %v5888_v59 = vpop.f32.mrb[46].mxu1 }
 0x2ed   :  { %v5889_v60 = vpop.f32.mrb[47].mxu1 }
 0x2ee   :  { %v4557_v61 = vadd.f32 %v5887_v58, %v4517_v55  ;;  %v4911_v55 = vand.u32 127, %v172_v18 }
 0x2f0   :  { %vm4913_vm5 = vcmp.eq.s32.totalorder %v4911_v55, 1  ;;  %vm4912_vm6 = vcmp.eq.s32.totalorder %v4911_v55, 0 }
 0x305   :  { %v5907_v62 = vpop.f32.mrb[48].mxu0 }
 0x306   :  { %v5908_v63 = vpop.f32.mrb[49].mxu0 }
 0x307   :  { %v5909_v0 = vadd.f32 %v5908_v63, %v5907_v62  ;;  %v5910_v2 = vpop.f32.mrb[50].mxu0 }
 0x308   :  { %v5911_v4 = vpop.f32.mrb[51].mxu0 }
 0x309   :  { %v4597_v5 = vadd.f32 %v5909_v0, %v4557_v61 }
 0x30b   :  { %v6985_v6 = vadd.f32 %v5354_v3, %v4597_v5 }
 0x30d   :  { %v4610_v7 = vpack.c.bf16 %v6985_v6, %v6985_v6 }
 0x30f   :  { %5967 = vmatmul.mubr.bf16.vlgmr.msra.gmra.mrb[48].mxu1 %v4610_v7 }
 0x310   :  { %5990 = vmatprep.mubr.msk.bf16.mxu1 %vm6654_vm0, %v6653_v1  ;;  %5983 = vmatpush3.bf16.msra.mxu1 %v6425_v10 }
 0x311   :  { %5984 = vmatprep.subr.bf16.mxu1 %v6653_v1 }
 0x314   :  { %5985 = vmatpush3.bf16.msra.mxu1 %v6426_v11 }
 0x315   :  { %5986 = vmatprep.subr.bf16.mxu1 %v6653_v1 }
 0x318   :  { %5987 = vmatpush3.bf16.msra.mxu1 %v6427_v30 }
 0x319   :  { %5988 = vmatprep.subr.bf16.mxu1 %v6653_v1 }
 0x31c   :  { %5989 = vmatpush3.bf16.msra.mxu1 %v6428_v21 }
 0x3e2   :  { %v4716_v13 = vpop.f32.mrb[48].mxu1 }
 0x3e3   :  { %v4717_v14 = vadd.f32 %v5355_v12, %v4716_v13  ;;  %v5968_v15 = vpop.f32.mrb[49].mxu1 }
 0x3e4   :  { %v4719_v16 = vpop.f32.mrb[50].mxu1 }
 0x3e5   :  { %v4722_v17 = vmax.f32 %v4717_v14, 0.0  ;;  %v5969_v19 = vpop.f32.mrb[51].mxu1 }
 0x3e7   :  { %v4723_v20 = vpack.c.bf16 %v4722_v17, %v4722_v17 }
 0x3e9   :  { %5979 = vmatmul.mubr.msk.bf16.vlgmr.msra.gmra.mrb[52].mxu0 %vm4763_vm3, %v4723_v20 }
 0x4bc   :  { %v4801_v23 = vpop.f32.mrb[52].mxu0 }
 0x4bd   :  { %v4802_v24 = vadd.f32 %v5364_v22, %v4801_v23  ;;  %v5980_v25 = vpop.f32.mrb[53].mxu0 }
 0x4be   :  { %v4804_v26 = vpop.f32.mrb[54].mxu0 }
 0x4bf   :  { %v4807_v27 = vmax.f32 %v4802_v24, 0.0  ;;  %v5981_v28 = vpop.f32.mrb[55].mxu0 }
 0x4c1   :  { %v4808_v29 = vpack.c.bf16 %v4807_v27, %v4807_v27 }
 0x4c3   :  { %5991 = vmatmul.mubr.msk.bf16.vlgmr.msra.gmra.mrb[52].mxu1 %vm4763_vm3, %v4808_v29 }
 0x596   :  { %v4885_v33 = vpop.f32.mrb[52].mxu1 }
 0x597   :  { %v4886_v1 = vadd.f32 %v5370_v32, %v4885_v33  ;;  %v5992_v34 = vpop.f32.mrb[53].mxu1 }
 0x598   :  { %v4888_v35 = vpop.f32.mrb[54].mxu1 }
 0x599   :  { %v4892_v36 = vand.u32 2147483647, %v4886_v1  ;;  %v5993_v37 = vpop.f32.mrb[55].mxu1  ;;  %v4906_v47 = vmax.f32 %v4886_v1, 0.0  ;;  %v4907_v48 = vmul.f32 %v4891_v45, %v4886_v1 }
 0x59b   :  { %v4893_v38 = vsub.f32 0.0, %v4892_v36  ;;  %v4908_v52 = vsub.f32 %v4906_v47, %v4907_v48 }
 0x59d   :  { %v4894_v39 = vmul.f32 1.442695, %v4893_v38 }
 0x59f   :  { %6429 = vpow2.f32 %v4894_v39 }
 0x5a9   :  { %v6430_v40 = vpop.eup %6429 }
 0x5aa   :  { %v4897_v41 = vadd.f32 1.0, %v6430_v40  ;;  %v4900_v42 = vmul.f32 0.33333334, %v6430_v40  ;;  %vm4896_vm4 = vcmp.gt.f32.partialorder %v6430_v40, 0.01 }
 0x5ac   :  { %6431 = vlog2.f32 %v4897_v41  ;;  %v4901_v43 = vadd.f32 -0.5, %v4900_v42 }
 0x5ae   :  { %v4902_v44 = vmul.f32 %v6430_v40, %v4901_v43 }
 0x5b0   :  { %v4903_v46 = vadd.f32 1.0, %v4902_v44 }
 0x5b2   :  { %v4904_v51 = vmul.f32 %v6430_v40, %v4903_v46 }
 0x5b6   :  { %v6432_v49 = vpop.eup %6431 }
 0x5b7   :  { %v4899_v50 = vmul.f32 0.6931472, %v6432_v49 }
 0x5b9   :  { %v4905_v53 = vsel %vm4896_vm4, %v4899_v50, %v4904_v51 }
 0x5ba   :  { %v4909_v54 = vadd.f32 %v4908_v52, %v4905_v53 }
 0x5bc   :  { %4916 = vperm.xlu0 %6009, %v4909_v54  }
 0x5c0   :  { %4922 = vperm.xlu0 %6009, %v4886_v1  }
 0x63b   :  { %v4917_v56 = vpop.permute.xlu0 %4916 }
 0x63c   :  { %v4919_v57 = vsel %vm4913_vm5, %v4917_v56, 0.0 }
 0x63f   :  { %v4923_v58 = vpop.permute.xlu0 %4922 }
 0x640   :  { %v4925_v59 = vsel %vm4912_vm6, %v4923_v58, %v4919_v57 }
 0x641   :  { %4927 = vrot.lane.b32.xlu1 %v4925_v59, %s6646_s24 }
 0x6b3   :  { %v4928_v60 = vpop.permute.xlu1 %4927 }
 0x6b4   :  { %v4930_v61 = vsel %vm4763_vm3, %v4807_v27, %v4928_v60 }
 0x6b5   :  { %v4933_v62 = vcombine.low %v6985_v6, %v4930_v61 }
 0x6b7   :  { %5376 = vst.sshfl [vmem:[#allocation17] sm:$0x33 pattern:$0x76325410] %v4933_v62 }
 0x6b8   :  { %6620 = shalt.err (!%p6617_p12)
}
 0x6b9   :  { %s6621_s24 = scalar_lea.hbm %s7040_s12, 64 }
 0x6ba   :  { %p6622_p13 = scmp.ne.s32.totalorder %s7040_s12, %s6621_s24  ;;  %p6625_p0 = scmp.lt.u32.totalorder %s6621_s24, %s7040_s12 }
 0x6bc   :  { %p6627_p1 = pnand %p6625_p0, %p6622_p13 }
 0x6be   :  { %6630 = shalt.err (!%p6627_p1)
}
 0x6bf   :  { %4952 = dma.vmem_to_hbm [thread:$0]  %s4950_s28, 64, %s7040_s12, [#allocation5]  }
 0x6c0   :  { %6641 = dma.done.wait [#allocation5], 64  }
 0x6c1   :  { %6642 = vsyncadd [#allocation5], 4294967232 }
 0x6c2   :  { %4956 = vsyncpa [#allocation4], 1 }
 0x6c3   :  { %4957 = vsyncpa [#allocation7], 1 }
 0x6c4   :  { %4958 = vsyncpa [#allocation10], 1 }
 0x6c5   :  { %4959 = vsyncpa [#allocation13], 1 }
 0x6c6   :  { %4960 = vsyncpa [#allocation16], 1 }
 0x6c7   :  { %4961 = vsyncpa [#allocation5], 1 }

</bundles_post_ra>
